<compile_context>
chip_gen: v7x
topology: tpu7x:2x2x1
jax: 0.10.0
libtpu: 0.0.40
codegen_flags: <defaults>
</compile_context>

<pallas_src>
import functools

import jax
import jax.numpy as jnp
from jax import lax
from jax.experimental import pallas as pl
from jax.experimental.pallas import tpu as pltpu

_LEAKY_SLOPE = 0.01   # nn.LeakyReLU default negative_slope
_BN_EPS = 1e-5        # nn.BatchNorm2d default eps
_TAPS = [(kh, kw) for kh in range(3) for kw in range(3)]


def _conv3x3_one_dot(xf_bf16, w_flat, *, wp, l_out):
    """3x3 'same' conv as a single K=9*Cin MXU matmul.

    xf_bf16: (Cin, Lin) bf16 -- per-batch zero-padded activation, spatial
             flattened as (H+3, Wp); Lin = (H+3)*Wp.
    w_flat : (Cout, 9*Cin) f32, column order = tap-major (kh*3+kw), cin-minor
             (matches the concat order below).
    Returns (Cout, l_out) f32 with l_out = H*Wp; lane columns with
    (p mod Wp) >= W are garbage and are masked / dropped by the caller.
    """
    xf = xf_bf16.astype(jnp.float32)           # one cast; 8-row f32 sublane tiles
    stack = jnp.concatenate(                   # (9*Cin, l_out): aligned sublane concat
        [xf[:, kh * wp + kw: kh * wp + kw + l_out] for kh, kw in _TAPS], axis=0)
    return jnp.dot(w_flat, stack, preferred_element_type=jnp.float32)


def _upblock_bn_kernel(x_ref, w_ref, gamma_ref, beta_ref, o_ref, *,
                       wp, w_valid, l_out, n, count):
    """last=False: Conv(no bias) -> BatchNorm(batch stats) -> LeakyReLU, fused."""
    w_flat = w_ref[...]                                        # (Cout, 9*Cin)

    # Valid-column mask built in-kernel: column index within each padded row.
    col = lax.broadcasted_iota(jnp.int32, (1, l_out), 1) % wp
    mask = (col < w_valid).astype(jnp.float32)                 # (1, l_out)

    # Pass 1: conv per batch + masked per-channel sums.
    convs = []
    csum = jnp.zeros((w_flat.shape[0], 1), jnp.float32)
    for b in range(n):
        acc = _conv3x3_one_dot(x_ref[b], w_flat, wp=wp, l_out=l_out)
        convs.append(acc)
        csum = csum + jnp.sum(acc * mask, axis=1, keepdims=True)
    mean = csum * (1.0 / count)                                # (Cout, 1)

    # Pass 2: centred second moment (avoids E[x^2] - mean^2 cancellation).
    cvar = jnp.zeros_like(csum)
    for b in range(n):
        d = (convs[b] - mean) * mask
        cvar = cvar + jnp.sum(d * d, axis=1, keepdims=True)
    inv = lax.rsqrt(cvar * (1.0 / count) + _BN_EPS)            # (Cout, 1)

    scale = gamma_ref[...] * inv
    shift = beta_ref[...] - mean * scale

    # Pass 3: BN affine + LeakyReLU, lane-dense stores (l_out % 128 == 0).
    for b in range(n):
        y = convs[b] * scale + shift
        o_ref[b] = jnp.where(y >= 0.0, y, _LEAKY_SLOPE * y)


def _upblock_tanh_kernel(x_ref, w_ref, bias_ref, o_ref, *, wp, l_out, n):
    """last=True: Conv(with bias) -> Tanh, fused."""
    w_flat = w_ref[...]
    bias = bias_ref[...]                                       # (Cout, 1)
    for b in range(n):
        acc = _conv3x3_one_dot(x_ref[b], w_flat, wp=wp, l_out=l_out)
        o_ref[b] = jnp.tanh(acc + bias)


@functools.partial(jax.jit, static_argnames=("last",))
def upblock_forward(from_below, from_skip, p0_param, p1_param, conv_w, *,
                    last=False):
    """Inputs in NCHW (PyTorch convention); conv_w in PyTorch (Cout, Cin, 3, 3).

    last=False: p0_param = BN gamma, p1_param = BN beta.
    last=True : p0_param = conv bias, p1_param unused (None).
    """
    n, cb, h0, w0 = from_below.shape
    cs = from_skip.shape[1]
    cin, cout = cb + cs, conv_w.shape[0]
    h, w = 2 * h0, 2 * w0

    # Padded width: >= w+2 for the 3x3 taps, and chosen so the flattened
    # output length h*wp is a multiple of 128 (lane-dense unmasked stores).
    wp = w + 2
    while (h * wp) % 128:
        wp += 1
    l_out = h * wp
    lin = (h + 3) * wp            # 1 top + 2 bottom pad rows keep all taps in-bounds

    # --- glue (XLA, fused under jit): concat + nearest-2x upsample + pad.
    # bf16 halves the HBM traffic into the kernel; channels stay on sublanes.
    # TODO(synk): fold this into the kernel (subpixel decomposition) to cut the
    # kernel's input HBM traffic another ~4x at large H/W.
    x = jnp.concatenate([from_below, from_skip], axis=1).astype(jnp.bfloat16)
    x = jnp.repeat(jnp.repeat(x, 2, axis=2), 2, axis=3)         # (N, Cin, H, W)
    x = jnp.pad(x, ((0, 0), (0, 0), (1, 2), (1, wp - w - 1)))   # (N, Cin, H+3, Wp)
    x_flat = x.reshape(n, cin, lin)                             # metadata reshape

    # (Cout, Cin, 3, 3) -> (Cout, kh, kw, Cin) -> (Cout, 9*Cin): tap-major,
    # cin-minor, matching the im2col row order in the kernel.
    w_flat = jnp.transpose(conv_w, (0, 2, 3, 1)).reshape(cout, 9 * cin)
    w_flat = w_flat.astype(jnp.float32)

    # One grid step / one VMEM-resident block (input ~40 KB, output ~37 KB,
    # im2col stack ~330 KB per batch transient) -- single DMA prologue, no
    # degenerate per-batch pipeline, all intermediates stay in VMEM.
    params = pltpu.CompilerParams(dimension_semantics=("arbitrary",),
                                  vmem_limit_bytes=32 * 1024 * 1024)
    x_spec = pl.BlockSpec((n, cin, lin), lambda i: (0, 0, 0))
    w_spec = pl.BlockSpec((cout, 9 * cin), lambda i: (0, 0))
    chan_spec = pl.BlockSpec((cout, 1), lambda i: (0, 0))
    out_spec = pl.BlockSpec((n, cout, l_out), lambda i: (0, 0, 0))
    out_shape = jax.ShapeDtypeStruct((n, cout, l_out), jnp.float32)

    if last:
        bias = p0_param.reshape(cout, 1).astype(jnp.float32)
        kern = functools.partial(_upblock_tanh_kernel, wp=wp, l_out=l_out, n=n)
        out_flat = pl.pallas_call(
            kern, out_shape=out_shape, grid=(1,),
            in_specs=[x_spec, w_spec, chan_spec],
            out_specs=out_spec, compiler_params=params,
        )(x_flat, w_flat, bias)
    else:
        gamma = p0_param.reshape(cout, 1).astype(jnp.float32)
        beta = p1_param.reshape(cout, 1).astype(jnp.float32)
        kern = functools.partial(_upblock_bn_kernel, wp=wp, w_valid=w,
                                 l_out=l_out, n=n, count=float(n * h * w))
        out_flat = pl.pallas_call(
            kern, out_shape=out_shape, grid=(1,),
            in_specs=[x_spec, w_spec, chan_spec, chan_spec],
            out_specs=out_spec, compiler_params=params,
        )(x_flat, w_flat, gamma, beta)

    # (N, Cout, H*Wp) -> (N, Cout, H, Wp) -> drop pad columns -> NCHW f32.
    # TODO(synk): when chaining UpBlocks, keep the padded lane-dense layout
    # between stages and de-pad once at the very end to skip this XLA pass.
    return out_flat.reshape(n, cout, h, wp)[:, :, :, :w]


def upblock_reference(from_below, from_skip, conv_w, p0, p1, *, last=False):
    """Pure-JAX f32 reference of the PyTorch forward (training-mode BN)."""
    x = jnp.concatenate([from_below, from_skip], axis=1)
    x = jnp.repeat(jnp.repeat(x, 2, axis=2), 2, axis=3)
    y = lax.conv_general_dilated(x, conv_w, window_strides=(1, 1), padding="SAME",
                                 dimension_numbers=("NCHW", "OIHW", "NCHW"))
    cout = conv_w.shape[0]
    if not last:
        mean = jnp.mean(y, axis=(0, 2, 3), keepdims=True)
        var = jnp.mean((y - mean) ** 2, axis=(0, 2, 3), keepdims=True)
        yh = (y - mean) * lax.rsqrt(var + _BN_EPS) * p0.reshape(1, cout, 1, 1) \
            + p1.reshape(1, cout, 1, 1)
        return jnp.where(yh >= 0.0, yh, _LEAKY_SLOPE * yh)
    return jnp.tanh(y + p0.reshape(1, cout, 1, 1))


if __name__ == "__main__":
    key = jax.random.PRNGKey(0)
    k1, k2, k3, k4, k5 = jax.random.split(key, 5)

    # UpBlock(combined_in_channels=8, out_channels=4); 16x16 -> 32x32 output.
    N, C_below, C_skip, H0, W0 = 2, 4, 4, 16, 16
    Cin, Cout = C_below + C_skip, 4

    from_below = jax.random.normal(k1, (N, C_below, H0, W0), jnp.float32)
    from_skip = jax.random.normal(k2, (N, C_skip, H0, W0), jnp.float32)
    conv_w = 0.1 * jax.random.normal(k3, (Cout, Cin, 3, 3), jnp.float32)
    gamma = 1.0 + 0.1 * jax.random.normal(k4, (Cout,), jnp.float32)
    beta = 0.1 * jax.random.normal(k5, (Cout,), jnp.float32)

    # last=False: Upsample -> Conv(no bias) -> BatchNorm -> LeakyReLU
    out = upblock_forward(from_below, from_skip, gamma, beta, conv_w, last=False)
    out = jax.block_until_ready(out)
    ref = upblock_reference(from_below, from_skip, conv_w, gamma, beta, last=False)
    assert out.shape == (N, Cout, 2 * H0, 2 * W0), out.shape
    assert bool(jnp.all(jnp.isfinite(out)))
    assert bool(jnp.allclose(out, ref, atol=3e-2, rtol=3e-2)), \
        float(jnp.max(jnp.abs(out - ref)))

    # last=True: Upsample -> Conv(with bias) -> Tanh
    bias = 0.1 * jax.random.normal(k4, (Cout,), jnp.float32)
    out2 = upblock_forward(from_below, from_skip, bias, None, conv_w, last=True)
    out2 = jax.block_until_ready(out2)
    ref2 = upblock_reference(from_below, from_skip, conv_w, bias, None, last=True)
    assert bool(jnp.allclose(out2, ref2, atol=3e-2, rtol=3e-2)), \
        float(jnp.max(jnp.abs(out2 - ref2)))

    print("KERNEL_OK")
</pallas_src>

<mosaic_0001>
module attributes {stable_mosaic.version = 11 : i64} {
  func.func @_upblock_bn_kernel(%arg0: i32, %arg1: memref<2x8x1260xbf16, #tpu.memory_space<vmem>>, %arg2: memref<4x72xf32, #tpu.memory_space<vmem>>, %arg3: memref<4x1xf32, #tpu.memory_space<vmem>>, %arg4: memref<4x1xf32, #tpu.memory_space<vmem>>, %arg5: memref<2x4x1152xf32, #tpu.memory_space<vmem>>) attributes {dimension_semantics = [#tpu.dimension_semantics<arbitrary>], iteration_bounds = array<i64: 1>, scalar_prefetch = 0 : i64, scratch_operands = 0 : i64, tpu.core_type = #tpu.core_type<tc>, window_params = [{pipeline_mode = #tpu.pipeline_mode<synchronous>, transform_indices = @transform_0, window_bounds = array<i64: 2, 8, 1260>}, {pipeline_mode = #tpu.pipeline_mode<synchronous>, transform_indices = @transform_1, window_bounds = array<i64: 4, 72>}, {pipeline_mode = #tpu.pipeline_mode<synchronous>, transform_indices = @transform_2, window_bounds = array<i64: 4, 1>}, {pipeline_mode = #tpu.pipeline_mode<synchronous>, transform_indices = @transform_3, window_bounds = array<i64: 4, 1>}, {pipeline_mode = #tpu.pipeline_mode<synchronous>, transform_indices = @transform_4, window_bounds = array<i64: 2, 4, 1152>}]} {
    %c0 = arith.constant 0 : index
    %c0_0 = arith.constant 0 : index
    %0 = vector.load %arg2[%c0, %c0_0] : memref<4x72xf32, #tpu.memory_space<vmem>>, vector<4x72xf32>
    %1 = tpu.iota {dimensions = array<i32: 1>} : vector<1x1152xi32>
    %c36_i32 = arith.constant 36 : i32
    %c0_i32 = arith.constant 0 : i32
    %2 = arith.cmpi eq, %c36_i32, %c0_i32 : i32
    %c1_i32 = arith.constant 1 : i32
    %3 = arith.select %2, %c1_i32, %c36_i32 : i32
    %4 = vector.broadcast %3 : i32 to vector<1x1152xi32>
    %5 = arith.remsi %1, %4 : vector<1x1152xi32>
    %c0_i32_1 = arith.constant 0 : i32
    %6 = vector.broadcast %c0_i32_1 : i32 to vector<1x1152xi32>
    %7 = arith.cmpi ne, %5, %6 : vector<1x1152xi32>
    %c0_i32_2 = arith.constant 0 : i32
    %8 = vector.broadcast %c0_i32_2 : i32 to vector<1x1152xi32>
    %9 = arith.cmpi slt, %5, %8 : vector<1x1152xi32>
    %c0_i32_3 = arith.constant 0 : i32
    %10 = arith.cmpi slt, %3, %c0_i32_3 : i32
    %11 = vector.broadcast %10 : i1 to vector<1x1152xi1>
    %12 = vector.broadcast %11 : vector<1x1152xi1> to vector<1x1152xi1>
    %13 = arith.xori %9, %12 : vector<1x1152xi1>
    %14 = arith.andi %13, %7 : vector<1x1152xi1>
    %15 = vector.broadcast %3 : i32 to vector<1x1152xi32>
    %16 = arith.addi %5, %15 : vector<1x1152xi32>
    %17 = arith.select %14, %16, %5 : vector<1x1152xi1>, vector<1x1152xi32>
    %c32_i32 = arith.constant 32 : i32
    %18 = vector.broadcast %c32_i32 : i32 to vector<1x1152xi32>
    %19 = arith.cmpi slt, %17, %18 : vector<1x1152xi32>
    %20 = arith.extui %19 : vector<1x1152xi1> to vector<1x1152xi32>
    %21 = arith.sitofp %20 : vector<1x1152xi32> to vector<1x1152xf32>
    %cst = arith.constant 0.000000e+00 : f32
    %22 = vector.broadcast %cst : f32 to vector<4x1xf32>
    %c0_4 = arith.constant 0 : index
    %c0_5 = arith.constant 0 : index
    %c0_6 = arith.constant 0 : index
    %23 = vector.load %arg1[%c0_4, %c0_5, %c0_6] : memref<2x8x1260xbf16, #tpu.memory_space<vmem>>, vector<1x8x1260xbf16>
    %24 = vector.shape_cast %23 : vector<1x8x1260xbf16> to vector<8x1260xbf16>
    %25 = arith.extf %24 : vector<8x1260xbf16> to vector<8x1260xf32>
    %26 = vector.extract_strided_slice %25 {offsets = [0, 0], sizes = [8, 1152], strides = [1, 1]} : vector<8x1260xf32> to vector<8x1152xf32>
    %27 = vector.extract_strided_slice %25 {offsets = [0, 1], sizes = [8, 1152], strides = [1, 1]} : vector<8x1260xf32> to vector<8x1152xf32>
    %28 = vector.extract_strided_slice %25 {offsets = [0, 2], sizes = [8, 1152], strides = [1, 1]} : vector<8x1260xf32> to vector<8x1152xf32>
    %29 = vector.extract_strided_slice %25 {offsets = [0, 36], sizes = [8, 1152], strides = [1, 1]} : vector<8x1260xf32> to vector<8x1152xf32>
    %30 = vector.extract_strided_slice %25 {offsets = [0, 37], sizes = [8, 1152], strides = [1, 1]} : vector<8x1260xf32> to vector<8x1152xf32>
    %31 = vector.extract_strided_slice %25 {offsets = [0, 38], sizes = [8, 1152], strides = [1, 1]} : vector<8x1260xf32> to vector<8x1152xf32>
    %32 = vector.extract_strided_slice %25 {offsets = [0, 72], sizes = [8, 1152], strides = [1, 1]} : vector<8x1260xf32> to vector<8x1152xf32>
    %33 = vector.extract_strided_slice %25 {offsets = [0, 73], sizes = [8, 1152], strides = [1, 1]} : vector<8x1260xf32> to vector<8x1152xf32>
    %34 = vector.extract_strided_slice %25 {offsets = [0, 74], sizes = [8, 1152], strides = [1, 1]} : vector<8x1260xf32> to vector<8x1152xf32>
    %35 = tpu.concatenate %26, %27, %28, %29, %30, %31, %32, %33, %34 in 0 : vector<8x1152xf32>, vector<8x1152xf32>, vector<8x1152xf32>, vector<8x1152xf32>, vector<8x1152xf32>, vector<8x1152xf32>, vector<8x1152xf32>, vector<8x1152xf32>, vector<8x1152xf32> -> vector<72x1152xf32>
    %cst_7 = arith.constant dense<0.000000e+00> : vector<4x1152xf32>
    %36 = tpu.matmul %0, %35, %cst_7 {dimension_numbers = #tpu.dot_dimension_numbers<[1], [0], [0], [1], [0, 0, 1, 1], [], []>} : vector<4x72xf32>, vector<72x1152xf32>, vector<4x1152xf32> -> vector<4x1152xf32>
    %37 = vector.broadcast %21 : vector<1x1152xf32> to vector<4x1152xf32>
    %38 = arith.mulf %36, %37 : vector<4x1152xf32>
    %cst_8 = arith.constant dense<0.000000e+00> : vector<4xf32>
    %39 = vector.multi_reduction <add>, %38, %cst_8 [1] : vector<4x1152xf32> to vector<4xf32>
    %40 = vector.shape_cast %39 : vector<4xf32> to vector<4x1xf32>
    %41 = arith.addf %22, %40 : vector<4x1xf32>
    %c1 = arith.constant 1 : index
    %c0_9 = arith.constant 0 : index
    %c0_10 = arith.constant 0 : index
    %42 = vector.load %arg1[%c1, %c0_9, %c0_10] : memref<2x8x1260xbf16, #tpu.memory_space<vmem>>, vector<1x8x1260xbf16>
    %43 = vector.shape_cast %42 : vector<1x8x1260xbf16> to vector<8x1260xbf16>
    %44 = arith.extf %43 : vector<8x1260xbf16> to vector<8x1260xf32>
    %45 = vector.extract_strided_slice %44 {offsets = [0, 0], sizes = [8, 1152], strides = [1, 1]} : vector<8x1260xf32> to vector<8x1152xf32>
    %46 = vector.extract_strided_slice %44 {offsets = [0, 1], sizes = [8, 1152], strides = [1, 1]} : vector<8x1260xf32> to vector<8x1152xf32>
    %47 = vector.extract_strided_slice %44 {offsets = [0, 2], sizes = [8, 1152], strides = [1, 1]} : vector<8x1260xf32> to vector<8x1152xf32>
    %48 = vector.extract_strided_slice %44 {offsets = [0, 36], sizes = [8, 1152], strides = [1, 1]} : vector<8x1260xf32> to vector<8x1152xf32>
    %49 = vector.extract_strided_slice %44 {offsets = [0, 37], sizes = [8, 1152], strides = [1, 1]} : vector<8x1260xf32> to vector<8x1152xf32>
    %50 = vector.extract_strided_slice %44 {offsets = [0, 38], sizes = [8, 1152], strides = [1, 1]} : vector<8x1260xf32> to vector<8x1152xf32>
    %51 = vector.extract_strided_slice %44 {offsets = [0, 72], sizes = [8, 1152], strides = [1, 1]} : vector<8x1260xf32> to vector<8x1152xf32>
    %52 = vector.extract_strided_slice %44 {offsets = [0, 73], sizes = [8, 1152], strides = [1, 1]} : vector<8x1260xf32> to vector<8x1152xf32>
    %53 = vector.extract_strided_slice %44 {offsets = [0, 74], sizes = [8, 1152], strides = [1, 1]} : vector<8x1260xf32> to vector<8x1152xf32>
    %54 = tpu.concatenate %45, %46, %47, %48, %49, %50, %51, %52, %53 in 0 : vector<8x1152xf32>, vector<8x1152xf32>, vector<8x1152xf32>, vector<8x1152xf32>, vector<8x1152xf32>, vector<8x1152xf32>, vector<8x1152xf32>, vector<8x1152xf32>, vector<8x1152xf32> -> vector<72x1152xf32>
    %cst_11 = arith.constant dense<0.000000e+00> : vector<4x1152xf32>
    %55 = tpu.matmul %0, %54, %cst_11 {dimension_numbers = #tpu.dot_dimension_numbers<[1], [0], [0], [1], [0, 0, 1, 1], [], []>} : vector<4x72xf32>, vector<72x1152xf32>, vector<4x1152xf32> -> vector<4x1152xf32>
    %56 = vector.broadcast %21 : vector<1x1152xf32> to vector<4x1152xf32>
    %57 = arith.mulf %55, %56 : vector<4x1152xf32>
    %cst_12 = arith.constant dense<0.000000e+00> : vector<4xf32>
    %58 = vector.multi_reduction <add>, %57, %cst_12 [1] : vector<4x1152xf32> to vector<4xf32>
    %59 = vector.shape_cast %58 : vector<4xf32> to vector<4x1xf32>
    %60 = arith.addf %41, %59 : vector<4x1xf32>
    %cst_13 = arith.constant 4.8828125E-4 : f32
    %61 = vector.broadcast %cst_13 : f32 to vector<4x1xf32>
    %62 = arith.mulf %60, %61 : vector<4x1xf32>
    %cst_14 = arith.constant 0.000000e+00 : f32
    %63 = vector.broadcast %cst_14 : f32 to vector<4x1xf32>
    %64 = vector.broadcast %62 : vector<4x1xf32> to vector<4x1152xf32>
    %65 = arith.subf %36, %64 : vector<4x1152xf32>
    %66 = vector.broadcast %21 : vector<1x1152xf32> to vector<4x1152xf32>
    %67 = arith.mulf %65, %66 : vector<4x1152xf32>
    %68 = arith.mulf %67, %67 : vector<4x1152xf32>
    %cst_15 = arith.constant dense<0.000000e+00> : vector<4xf32>
    %69 = vector.multi_reduction <add>, %68, %cst_15 [1] : vector<4x1152xf32> to vector<4xf32>
    %70 = vector.shape_cast %69 : vector<4xf32> to vector<4x1xf32>
    %71 = arith.addf %63, %70 : vector<4x1xf32>
    %72 = vector.broadcast %62 : vector<4x1xf32> to vector<4x1152xf32>
    %73 = arith.subf %55, %72 : vector<4x1152xf32>
    %74 = vector.broadcast %21 : vector<1x1152xf32> to vector<4x1152xf32>
    %75 = arith.mulf %73, %74 : vector<4x1152xf32>
    %76 = arith.mulf %75, %75 : vector<4x1152xf32>
    %cst_16 = arith.constant dense<0.000000e+00> : vector<4xf32>
    %77 = vector.multi_reduction <add>, %76, %cst_16 [1] : vector<4x1152xf32> to vector<4xf32>
    %78 = vector.shape_cast %77 : vector<4xf32> to vector<4x1xf32>
    %79 = arith.addf %71, %78 : vector<4x1xf32>
    %cst_17 = arith.constant 4.8828125E-4 : f32
    %80 = vector.broadcast %cst_17 : f32 to vector<4x1xf32>
    %81 = arith.mulf %79, %80 : vector<4x1xf32>
    %cst_18 = arith.constant 9.99999974E-6 : f32
    %82 = vector.broadcast %cst_18 : f32 to vector<4x1xf32>
    %83 = arith.addf %81, %82 : vector<4x1xf32>
    %84 = math.rsqrt %83 : vector<4x1xf32>
    %c0_19 = arith.constant 0 : index
    %c0_20 = arith.constant 0 : index
    %85 = vector.load %arg3[%c0_19, %c0_20] : memref<4x1xf32, #tpu.memory_space<vmem>>, vector<4x1xf32>
    %86 = arith.mulf %85, %84 : vector<4x1xf32>
    %c0_21 = arith.constant 0 : index
    %c0_22 = arith.constant 0 : index
    %87 = vector.load %arg4[%c0_21, %c0_22] : memref<4x1xf32, #tpu.memory_space<vmem>>, vector<4x1xf32>
    %88 = arith.mulf %62, %86 : vector<4x1xf32>
    %89 = arith.subf %87, %88 : vector<4x1xf32>
    %90 = vector.broadcast %86 : vector<4x1xf32> to vector<4x1152xf32>
    %91 = arith.mulf %36, %90 : vector<4x1152xf32>
    %92 = vector.broadcast %89 : vector<4x1xf32> to vector<4x1152xf32>
    %93 = arith.addf %91, %92 : vector<4x1152xf32>
    %cst_23 = arith.constant 0.000000e+00 : f32
    %94 = vector.broadcast %cst_23 : f32 to vector<4x1152xf32>
    %95 = arith.cmpf oge, %93, %94 : vector<4x1152xf32>
    %cst_24 = arith.constant 0.00999999977 : f32
    %96 = vector.broadcast %cst_24 : f32 to vector<4x1152xf32>
    %97 = arith.mulf %96, %93 : vector<4x1152xf32>
    %98 = arith.select %95, %93, %97 : vector<4x1152xi1>, vector<4x1152xf32>
    %c0_25 = arith.constant 0 : index
    %c0_26 = arith.constant 0 : index
    %c0_27 = arith.constant 0 : index
    %99 = vector.load %arg5[%c0_25, %c0_26, %c0_27] : memref<2x4x1152xf32, #tpu.memory_space<vmem>>, vector<1x4x1152xf32>
    %100 = vector.shape_cast %99 : vector<1x4x1152xf32> to vector<4x1152xf32>
    %101 = vector.shape_cast %98 : vector<4x1152xf32> to vector<1x4x1152xf32>
    tpu.vector_store %arg5[%c0_25, %c0_26, %c0_27], %101 {strides = array<i32>} : memref<2x4x1152xf32, #tpu.memory_space<vmem>>, vector<1x4x1152xf32>,
    %102 = vector.broadcast %86 : vector<4x1xf32> to vector<4x1152xf32>
    %103 = arith.mulf %55, %102 : vector<4x1152xf32>
    %104 = vector.broadcast %89 : vector<4x1xf32> to vector<4x1152xf32>
    %105 = arith.addf %103, %104 : vector<4x1152xf32>
    %cst_28 = arith.constant 0.000000e+00 : f32
    %106 = vector.broadcast %cst_28 : f32 to vector<4x1152xf32>
    %107 = arith.cmpf oge, %105, %106 : vector<4x1152xf32>
    %cst_29 = arith.constant 0.00999999977 : f32
    %108 = vector.broadcast %cst_29 : f32 to vector<4x1152xf32>
    %109 = arith.mulf %108, %105 : vector<4x1152xf32>
    %110 = arith.select %107, %105, %109 : vector<4x1152xi1>, vector<4x1152xf32>
    %c1_30 = arith.constant 1 : index
    %c0_31 = arith.constant 0 : index
    %c0_32 = arith.constant 0 : index
    %111 = vector.load %arg5[%c1_30, %c0_31, %c0_32] : memref<2x4x1152xf32, #tpu.memory_space<vmem>>, vector<1x4x1152xf32>
    %112 = vector.shape_cast %111 : vector<1x4x1152xf32> to vector<4x1152xf32>
    %113 = vector.shape_cast %110 : vector<4x1152xf32> to vector<1x4x1152xf32>
    tpu.vector_store %arg5[%c1_30, %c0_31, %c0_32], %113 {strides = array<i32>} : memref<2x4x1152xf32, #tpu.memory_space<vmem>>, vector<1x4x1152xf32>,
    return
  }
  func.func @transform_0(%arg0: i32) -> (i32, i32, i32) {
    %c0_i32 = arith.constant 0 : i32
    %c0_i32_0 = arith.constant 0 : i32
    %c0_i32_1 = arith.constant 0 : i32
    %c0_i32_2 = arith.constant 0 : i32
    return %c0_i32, %c0_i32_0, %c0_i32_1 : i32, i32, i32
  }
  func.func @transform_1(%arg0: i32) -> (i32, i32) {
    %c0_i32 = arith.constant 0 : i32
    %c0_i32_0 = arith.constant 0 : i32
    %c0_i32_1 = arith.constant 0 : i32
    return %c0_i32, %c0_i32_0 : i32, i32
  }
  func.func @transform_2(%arg0: i32) -> (i32, i32) {
    %c0_i32 = arith.constant 0 : i32
    %c0_i32_0 = arith.constant 0 : i32
    %c0_i32_1 = arith.constant 0 : i32
    return %c0_i32, %c0_i32_0 : i32, i32
  }
  func.func @transform_3(%arg0: i32) -> (i32, i32) {
    %c0_i32 = arith.constant 0 : i32
    %c0_i32_0 = arith.constant 0 : i32
    %c0_i32_1 = arith.constant 0 : i32
    return %c0_i32, %c0_i32_0 : i32, i32
  }
  func.func @transform_4(%arg0: i32) -> (i32, i32, i32) {
    %c0_i32 = arith.constant 0 : i32
    %c0_i32_0 = arith.constant 0 : i32
    %c0_i32_1 = arith.constant 0 : i32
    %c0_i32_2 = arith.constant 0 : i32
    return %c0_i32, %c0_i32_0, %c0_i32_1 : i32, i32, i32
  }
}

</mosaic_0001>

<bundles_post_ra>
// kernel: upblock_forward.1
= control target key start
LH: loop header
LB: loop body
LE: loop exit
PB: predicated region body
PF: predicated region fallthrough
CT: control target
= control target key end

     0   :  { %s2544_s21 = smov 127   ;;  %s2545_s22 = smov 126   ;;  %v2551_v17 = vmov 0.0   ;;  %vm244_vm0 = vcmask 1039360   ;;  %vm283_vm1 = vcmask 1031168   ;;  %vm322_vm2 = vcmask 752640   ;;  %s3617_s0 = inlined_call_operand.vmem [shape: bf16[2,8,1260], index: 0, kind: input, shape index: {}]   ;;  %s3618_s1 = inlined_call_operand.vmem [shape: f32[4,72], index: 1, kind: input, shape index: {}]   ;;  %s3619_s2 = inlined_call_operand.vmem [shape: f32[4,1], index: 2, kind: input, shape index: {}]   ;;  %s3620_s3 = inlined_call_operand.vmem [shape: f32[4,1], index: 3, kind: input, shape index: {}]   ;;  %s3621_s4 = inlined_call_operand.vmem [shape: f32[2,4,1152], index: 4, kind: output, shape index: {}]  }
   0x1   :  { %v2584_v0 = vld [vmem:[%s3617_s0 + $0x10] sm:$0xff]  ;;  %v2589_v1 = vld [vmem:[%s3617_s0] sm:$0xff]  ;;  %v2594_v2 = vld [vmem:[%s3617_s0 + $0x8] sm:$0xff]  ;;  %s2546_s23 = smov 92   ;;  %s2547_s24 = smov 91   ;;  %604 = vmatprep.mubr.f32.mxu0 %v2551_v17  ;;  %675 = vmatprep.mubr.f32.mxu1 %v2551_v17  ;;  %vm361_vm3 = vcmask 744448  }
   0x2   :  { %v208_v3 = vunpack.c.l.bf16 %v2584_v0  ;;  %v209_v4 = vunpack.c.h.bf16 %v2584_v0  ;;  %v205_v5 = vunpack.c.h.bf16 %v2589_v1  ;;  %v206_v6 = vunpack.c.l.bf16 %v2594_v2  ;;  %s2548_s25 = smov 90   ;;  %s2549_s26 = smov 56   ;;  %v2633_v12 = vld [vmem:[%s3617_s0 + $0x18] sm:$0xff]  ;;  %v2648_v16 = vld [vmem:[%s3617_s0 + $0x20] sm:$0xff]  ;;  %v2675_v21 = vld [vmem:[%s3617_s0 + $0x28] sm:$0xff] }
   0x3   :  { %v207_v7 = vunpack.c.h.bf16 %v2594_v2  ;;  %v204_v8 = vunpack.c.l.bf16 %v2589_v1  ;;  %s2550_s29 = smov 55   ;;  %v210_v13 = vunpack.c.l.bf16 %v2633_v12  ;;  %v211_v14 = vunpack.c.h.bf16 %v2633_v12  ;;  %s2552_s6 = smov 54   ;;  %v2680_v22 = vld [vmem:[%s3617_s0 + $0x30] sm:$0xff]  ;;  %v1904_v29 = vld [vmem:[%s3617_s0 + $0x40] sm:$0xff]  ;;  %v2714_v30 = vld [vmem:[%s3617_s0 + $0x38] sm:$0xff] }
   0x4   :  { %v2170_v9 = vpack.i.bf16 %v209_v4, %v208_v3  ;;  %v2160_v10 = vpack.i.bf16 %v206_v6, %v205_v5  ;;  %v212_v18 = vunpack.c.l.bf16 %v2648_v16  ;;  %v213_v19 = vunpack.c.h.bf16 %v2648_v16 }
   0x5   :  { %v2165_v11 = vpack.i.bf16 %v207_v7, %v204_v8  ;;  %v2265_v15 = vpack.i.bf16 %v211_v14, %v210_v13  ;;  %v930_v23 = vunpack.c.l.bf16 %v2675_v21  ;;  %v933_v24 = vunpack.c.h.bf16 %v2680_v22 }
   0x6   :  { %2171 = vrot.lane.b32.xlu1 %v2170_v9, %s2544_s21  ;;  %2161 = vrot.lane.b32.xlu0 %v2160_v10, %s2544_s21  ;;  %v2280_v20 = vpack.i.bf16 %v213_v19, %v212_v18  ;;  %v931_v25 = vunpack.c.h.bf16 %v2675_v21  ;;  %v932_v26 = vunpack.c.l.bf16 %v2680_v22  ;;  %v2716_v31 = vunpack.c.l.bf16 %v1904_v29 }
   0x7   :  { %v2365_v27 = vpack.i.bf16 %v933_v24, %v930_v23  ;;  %v2718_v32 = vunpack.c.h.bf16 %v1904_v29  ;;  %v934_v33 = vunpack.c.l.bf16 %v2714_v30  ;;  %v935_v34 = vunpack.c.h.bf16 %v2714_v30 }
   0x8   :  { %v2360_v28 = vpack.i.bf16 %v932_v26, %v931_v25  ;;  %vm400_vm4 = vcmask 736256   ;;  %vm439_vm5 = vcmask 457728   ;;  %vm478_vm6 = vcmask 449536  }
   0x9   :  { %v2435_v35 = vpack.i.bf16 %v2718_v32, %v2716_v31  ;;  %v2732_v36 = vpack.i.bf16 %v935_v34, %v934_v33  ;;  %vm517_vm7 = vcmask 441344   ;;  %vm536_vm8 = vcmask 588800  }
   0xa   :  { %2176 = vrot.lane.b32.xlu1 %v2160_v10, %s2545_s22  ;;  %2166 = vrot.lane.b32.xlu0 %v2165_v11, %s2544_s21  ;;  %vm2554_vm9 = vmmov 0  }
   0xe   :  { %2186 = vrot.lane.b32.xlu1 %v2165_v11, %s2545_s22  ;;  %2181 = vrot.lane.b32.xlu0 %v2160_v10, %s2546_s23 }
  0x12   :  { %2196 = vrot.lane.b32.xlu1 %v2170_v9, %s2545_s22  ;;  %2191 = vrot.lane.b32.xlu0 %v2165_v11, %s2546_s23 }
  0x16   :  { %2206 = vrot.lane.b32.xlu1 %v2160_v10, %s2547_s24  ;;  %2201 = vrot.lane.b32.xlu0 %v2170_v9, %s2546_s23 }
  0x1a   :  { %2216 = vrot.lane.b32.xlu1 %v2165_v11, %s2547_s24  ;;  %2211 = vrot.lane.b32.xlu0 %v2160_v10, %s2548_s25 }
  0x1e   :  { %2226 = vrot.lane.b32.xlu1 %v2170_v9, %s2547_s24  ;;  %2221 = vrot.lane.b32.xlu0 %v2165_v11, %s2548_s25 }
  0x22   :  { %2236 = vrot.lane.b32.xlu1 %v2160_v10, %s2549_s26  ;;  %2231 = vrot.lane.b32.xlu0 %v2170_v9, %s2548_s25 }
  0x26   :  { %2246 = vrot.lane.b32.xlu1 %v2165_v11, %s2549_s26  ;;  %2241 = vrot.lane.b32.xlu0 %v2160_v10, %s2550_s29 }
  0x2a   :  { %2256 = vrot.lane.b32.xlu1 %v2170_v9, %s2549_s26  ;;  %2251 = vrot.lane.b32.xlu0 %v2165_v11, %s2550_s29 }
  0x2e   :  { %2266 = vrot.lane.b32.xlu1 %v2265_v15, %s2544_s21  ;;  %2261 = vrot.lane.b32.xlu0 %v2170_v9, %s2550_s29 }
  0x32   :  { %2276 = vrot.lane.b32.xlu1 %v2165_v11, %s2552_s6  ;;  %2271 = vrot.lane.b32.xlu0 %v2160_v10, %s2552_s6 }
  0x36   :  { %2286 = vrot.lane.b32.xlu1 %v2265_v15, %s2545_s22  ;;  %2281 = vrot.lane.b32.xlu0 %v2280_v20, %s2544_s21 }
  0x3a   :  { %2296 = vrot.lane.b32.xlu1 %v2170_v9, %s2552_s6  ;;  %2291 = vrot.lane.b32.xlu0 %v2265_v15, %s2546_s23 }
  0x3e   :  { %2306 = vrot.lane.b32.xlu1 %v2280_v20, %s2546_s23  ;;  %2301 = vrot.lane.b32.xlu0 %v2280_v20, %s2545_s22 }
  0x42   :  { %2316 = vrot.lane.b32.xlu1 %v2265_v15, %s2548_s25  ;;  %2311 = vrot.lane.b32.xlu0 %v2265_v15, %s2547_s24 }
  0x46   :  { %2326 = vrot.lane.b32.xlu1 %v2280_v20, %s2548_s25  ;;  %2321 = vrot.lane.b32.xlu0 %v2280_v20, %s2547_s24 }
  0x4a   :  { %2336 = vrot.lane.b32.xlu1 %v2265_v15, %s2550_s29  ;;  %2331 = vrot.lane.b32.xlu0 %v2265_v15, %s2549_s26 }
  0x4e   :  { %2346 = vrot.lane.b32.xlu1 %v2280_v20, %s2550_s29  ;;  %2341 = vrot.lane.b32.xlu0 %v2280_v20, %s2549_s26 }
  0x52   :  { %2356 = vrot.lane.b32.xlu1 %v2280_v20, %s2552_s6  ;;  %2351 = vrot.lane.b32.xlu0 %v2265_v15, %s2552_s6  ;;  %v1905_v20 = vld [vmem:[%s3617_s0 + $0x48] sm:$0xff] }
  0x56   :  { %2366 = vrot.lane.b32.xlu1 %v2365_v27, %s2544_s21  ;;  %2361 = vrot.lane.b32.xlu0 %v2360_v28, %s2544_s21 }
  0x5a   :  { %2376 = vrot.lane.b32.xlu1 %v2360_v28, %s2546_s23  ;;  %2371 = vrot.lane.b32.xlu0 %v2360_v28, %s2545_s22 }
  0x5e   :  { %2386 = vrot.lane.b32.xlu1 %v2365_v27, %s2546_s23  ;;  %2381 = vrot.lane.b32.xlu0 %v2365_v27, %s2545_s22 }
  0x62   :  { %2396 = vrot.lane.b32.xlu1 %v2360_v28, %s2548_s25  ;;  %2391 = vrot.lane.b32.xlu0 %v2360_v28, %s2547_s24 }
  0x66   :  { %2406 = vrot.lane.b32.xlu1 %v2365_v27, %s2548_s25  ;;  %2401 = vrot.lane.b32.xlu0 %v2365_v27, %s2547_s24 }
  0x6a   :  { %2416 = vrot.lane.b32.xlu1 %v2360_v28, %s2550_s29  ;;  %2411 = vrot.lane.b32.xlu0 %v2360_v28, %s2549_s26 }
  0x6e   :  { %2426 = vrot.lane.b32.xlu1 %v2365_v27, %s2550_s29  ;;  %2421 = vrot.lane.b32.xlu0 %v2365_v27, %s2549_s26 }
  0x72   :  { %2436 = vrot.lane.b32.xlu1 %v2435_v35, %s2544_s21  ;;  %2431 = vrot.lane.b32.xlu0 %v2732_v36, %s2544_s21 }
  0x76   :  { %2446 = vrot.lane.b32.xlu1 %v2732_v36, %s2546_s23  ;;  %2441 = vrot.lane.b32.xlu0 %v2732_v36, %s2545_s22 }
  0x78   :  { %v2741_v37 = vpop.permute.xlu1 %2171  ;;  %v2162_v38 = vpop.permute.xlu0 %2161 }
  0x79   :  { %v2164_v39 = vunpack.i.h.bf16 %v2162_v38  ;;  %v2163_v40 = vunpack.i.l.bf16 %v2162_v38  ;;  %v2173_v41 = vunpack.i.l.bf16 %v2741_v37 }
  0x7a   :  { %2456 = vrot.lane.b32.xlu1 %v2365_v27, %s2552_s6  ;;  %2451 = vrot.lane.b32.xlu0 %v2360_v28, %s2552_s6 }
  0x7b   :  { %v246_v42 = vsel %vm244_vm0, %v2163_v40, %v2164_v39 }
  0x7c   :  { %v2747_v43 = vpop.permute.xlu1 %2176  ;;  %v2167_v44 = vpop.permute.xlu0 %2166  ;;  %v1978_v45 = vpack.c.bf16 %v246_v42, %v205_v5  ;;  %v2798_v42 = vunpack.c.h.bf16 %v1905_v20 }
  0x7d   :  { %v2179_v46 = vunpack.i.h.bf16 %v2747_v43  ;;  %v2178_v47 = vunpack.i.l.bf16 %v2747_v43  ;;  %v2169_v48 = vunpack.i.h.bf16 %v2167_v44  ;;  %v2168_v49 = vunpack.i.l.bf16 %v2167_v44 }
  0x7e   :  { %1979 = vmatprep.subr.bf16.mxu0 %v1978_v45  ;;  %2466 = vrot.lane.b32.xlu1 %v2435_v35, %s2546_s23 }
  0x7f   :  { %2461 = vrot.lane.b32.xlu0 %v2435_v35, %s2545_s22  ;;  %v245_v50 = vsel %vm244_vm0, %v2168_v49, %v2163_v40  ;;  %v248_v51 = vsel %vm244_vm0, %v2169_v48, %v2173_v41  ;;  %v247_v52 = vsel %vm244_vm0, %v2164_v39, %v2169_v48  ;;  %v285_v60 = vsel %vm283_vm1, %v2178_v47, %v2179_v46 }
  0x80   :  { %v2187_v53 = vpop.permute.xlu1 %2186  ;;  %v2182_v54 = vpop.permute.xlu0 %2181  ;;  %v1980_v55 = vpack.c.bf16 %v245_v50, %v204_v8  ;;  %v1994_v56 = vpack.c.bf16 %v248_v51, %v207_v7  ;;  %v1996_v57 = vpack.c.bf16 %v247_v52, %v206_v6  ;;  %v2796_v40 = vunpack.c.l.bf16 %v1905_v20 }
  0x81   :  { %v2184_v58 = vunpack.i.h.bf16 %v2182_v54  ;;  %v2183_v59 = vunpack.i.l.bf16 %v2182_v54  ;;  %v2188_v61 = vunpack.i.l.bf16 %v2187_v53  ;;  %v2189_v10 = vunpack.i.h.bf16 %v2187_v53 }
  0x82   :  { %2476 = vrot.lane.b32.xlu1 %v2732_v36, %s2548_s25  ;;  %1981 = vmatpush1.bf16.msra.mxu0 %v1980_v55  ;;  %v2500_v53 = vpack.i.bf16 %v2798_v42, %v2796_v40 }
  0x83   :  { %2471 = vrot.lane.b32.xlu0 %v2732_v36, %s2547_s24  ;;  %1995 = vmatprep.subr.bf16.mxu1 %v1994_v56  ;;  %v324_v62 = vsel %vm322_vm2, %v2183_v59, %v2184_v58  ;;  %v284_v8 = vsel %vm283_vm1, %v2188_v61, %v2178_v47  ;;  %v286_v47 = vsel %vm283_vm1, %v2179_v46, %v2189_v10 }
  0x84   :  { %1997 = vmatpush1.bf16.msra.mxu1 %v1996_v57  ;;  %v2772_v63 = vpop.permute.xlu1 %2196  ;;  %v2192_v1 = vpop.permute.xlu0 %2191  ;;  %v1982_v2 = vpack.c.bf16 %v324_v62, %v285_v60 }
  0x85   :  { %v2193_v5 = vunpack.i.l.bf16 %v2192_v1  ;;  %v2194_v6 = vunpack.i.h.bf16 %v2192_v1  ;;  %v2198_v7 = vunpack.i.l.bf16 %v2772_v63 }
  0x86   :  { %2486 = vrot.lane.b32.xlu1 %v2435_v35, %s2548_s25  ;;  %1983 = vmatprep.subr.bf16.mxu0 %v1982_v2 }
  0x87   :  { %2481 = vrot.lane.b32.xlu0 %v2435_v35, %s2547_s24  ;;  %v323_v9 = vsel %vm322_vm2, %v2193_v5, %v2183_v59  ;;  %v325_v35 = vsel %vm322_vm2, %v2184_v58, %v2194_v6  ;;  %v287_v38 = vsel %vm283_vm1, %v2189_v10, %v2198_v7 }
  0x88   :  { %v2207_v11 = vpop.permute.xlu1 %2206  ;;  %v2779_v15 = vpop.permute.xlu0 %2201  ;;  %v1984_v19 = vpack.c.bf16 %v323_v9, %v284_v8  ;;  %v2000_v50 = vpack.c.bf16 %v325_v35, %v286_v47 }
  0x89   :  { %v2209_v27 = vunpack.i.h.bf16 %v2207_v11  ;;  %v2208_v28 = vunpack.i.l.bf16 %v2207_v11  ;;  %v2203_v29 = vunpack.i.l.bf16 %v2779_v15 }
  0x8a   :  { %2496 = vrot.lane.b32.xlu1 %v2732_v36, %s2550_s29  ;;  %1985 = vmatpush1.bf16.msra.mxu0 %v1984_v19 }
  0x8b   :  { %2491 = vrot.lane.b32.xlu0 %v2732_v36, %s2549_s26  ;;  %v326_v39 = vsel %vm322_vm2, %v2194_v6, %v2203_v29  ;;  %v363_v51 = vsel %vm361_vm3, %v2208_v28, %v2209_v27 }
  0x8c   :  { %v2217_v43 = vpop.permute.xlu1 %2216  ;;  %v2212_v44 = vpop.permute.xlu0 %2211  ;;  %v1998_v45 = vpack.c.bf16 %v326_v39, %v287_v38 }
  0x8d   :  { %v2214_v48 = vunpack.i.h.bf16 %v2212_v44  ;;  %v2213_v49 = vunpack.i.l.bf16 %v2212_v44  ;;  %v2218_v52 = vunpack.i.l.bf16 %v2217_v43  ;;  %v2219_v62 = vunpack.i.h.bf16 %v2217_v43 }
  0x8e   :  { %1190 = vrot.lane.b32.xlu1 %v2716_v31, %s2550_s29  ;;  %1999 = vmatprep.subr.bf16.mxu1 %v1998_v45  ;;  %v2525_v45 = vpack.i.bf16 %v2796_v40, %v2718_v32 }
  0x8f   :  { %1152 = vrot.lane.b32.xlu0 %v2716_v31, %s2549_s26  ;;  %2001 = vmatpush1.bf16.msra.mxu1 %v2000_v50  ;;  %v402_v46 = vsel %vm400_vm4, %v2213_v49, %v2214_v48  ;;  %v362_v60 = vsel %vm361_vm3, %v2218_v52, %v2208_v28  ;;  %v364_v35 = vsel %vm361_vm3, %v2209_v27, %v2219_v62 }
  0x90   :  { %v2809_v54 = vpop.permute.xlu1 %2226  ;;  %v2222_v55 = vpop.permute.xlu0 %2221  ;;  %v1986_v56 = vpack.c.bf16 %v402_v46, %v363_v51 }
  0x91   :  { %v2223_v57 = vunpack.i.l.bf16 %v2222_v55  ;;  %v2224_v58 = vunpack.i.h.bf16 %v2222_v55  ;;  %v2228_v59 = vunpack.i.l.bf16 %v2809_v54 }
  0x92   :  { %2506 = vrot.lane.b32.xlu1 %v2732_v36, %s2552_s6  ;;  %1987 = vmatprep.subr.bf16.mxu0 %v1986_v56 }
  0x93   :  { %2501 = vrot.lane.b32.xlu0 %v2500_v53, %s2544_s21  ;;  %v401_v61 = vsel %vm400_vm4, %v2223_v57, %v2213_v49  ;;  %v403_v36 = vsel %vm400_vm4, %v2214_v48, %v2224_v58  ;;  %v365_v10 = vsel %vm361_vm3, %v2219_v62, %v2228_v59 }
  0x94   :  { %v2237_v1 = vpop.permute.xlu1 %2236  ;;  %v2817_v2 = vpop.permute.xlu0 %2231  ;;  %v1988_v5 = vpack.c.bf16 %v401_v61, %v362_v60  ;;  %v2004_v43 = vpack.c.bf16 %v403_v36, %v364_v35 }
  0x95   :  { %v2239_v6 = vunpack.i.h.bf16 %v2237_v1  ;;  %v2238_v8 = vunpack.i.l.bf16 %v2237_v1  ;;  %v2233_v9 = vunpack.i.l.bf16 %v2817_v2 }
  0x96   :  { %2516 = vrot.lane.b32.xlu1 %v2500_v53, %s2546_s23  ;;  %1989 = vmatpush1.bf16.msra.mxu0 %v1988_v5  ;;  %v2174_v5 = vunpack.i.h.bf16 %v2741_v37 }
  0x97   :  { %2511 = vrot.lane.b32.xlu0 %v2500_v53, %s2545_s22  ;;  %v404_v11 = vsel %vm400_vm4, %v2224_v58, %v2233_v9  ;;  %v441_v44 = vsel %vm439_vm5, %v2238_v8, %v2239_v6 }
  0x98   :  { %v2247_v19 = vpop.permute.xlu1 %2246  ;;  %v2242_v20 = vpop.permute.xlu0 %2241  ;;  %v2002_v28 = vpack.c.bf16 %v404_v11, %v365_v10 }
  0x99   :  { %v2244_v38 = vunpack.i.h.bf16 %v2242_v20  ;;  %v2243_v39 = vunpack.i.l.bf16 %v2242_v20  ;;  %v2248_v47 = vunpack.i.l.bf16 %v2247_v19 }
  0x9a   :  { %2521 = vrot.lane.b32.xlu1 %v2500_v53, %s2547_s24  ;;  %2003 = vmatprep.subr.bf16.mxu1 %v2002_v28  ;;  %v2249_v53 = vunpack.i.h.bf16 %v2247_v19 }
  0x9b   :  { %1228 = vrot.lane.b32.xlu0 %v2716_v31, %s2552_s6  ;;  %2005 = vmatpush1.bf16.msra.mxu1 %v2004_v43  ;;  %v480_v48 = vsel %vm478_vm6, %v2243_v39, %v2244_v38  ;;  %v440_v55 = vsel %vm439_vm5, %v2248_v47, %v2238_v8 }
  0x9c   :  { %v2837_v27 = vpop.permute.xlu1 %2256  ;;  %v2252_v49 = vpop.permute.xlu0 %2251  ;;  %v1990_v50 = vpack.c.bf16 %v480_v48, %v441_v44  ;;  %v442_v10 = vsel %vm439_vm5, %v2239_v6, %v2249_v53  ;;  %v249_v44 = vsel %vm244_vm0, %v2173_v41, %v2174_v5  ;;  %v2873_v48 = vld [vmem:[%s3618_s1] sm:$0xf] }
  0x9d   :  { %v2254_v51 = vunpack.i.h.bf16 %v2252_v49  ;;  %v2253_v52 = vunpack.i.l.bf16 %v2252_v49  ;;  %v2258_v46 = vunpack.i.l.bf16 %v2837_v27 }
  0x9e   :  { %2526 = vrot.lane.b32.xlu1 %v2525_v45, %s2549_s26  ;;  %1991 = vmatprep.subr.bf16.mxu0 %v1990_v50  ;;  %v2012_v50 = vpack.c.bf16 %v249_v44, %v208_v3 }
  0x9f   :  { %1118 = vrot.lane.b32.xlu0 %v2796_v40, %s2548_s25  ;;  %v479_v56 = vsel %vm478_vm6, %v2253_v52, %v2243_v39  ;;  %v481_v1 = vsel %vm478_vm6, %v2244_v38, %v2254_v51  ;;  %v443_v8 = vsel %vm439_vm5, %v2249_v53, %v2258_v46  ;;  %v2199_v52 = vunpack.i.h.bf16 %v2772_v63 }
  0xa0   :  { %v2267_v57 = vpop.permute.xlu1 %2266  ;;  %v2845_v58 = vpop.permute.xlu0 %2261  ;;  %v1992_v60 = vpack.c.bf16 %v479_v56, %v440_v55  ;;  %v2008_v28 = vpack.c.bf16 %v481_v1, %v442_v10  ;;  %v2204_v53 = vunpack.i.h.bf16 %v2779_v15 }
  0xa1   :  { %v2268_v61 = vunpack.i.l.bf16 %v2267_v57  ;;  %v2263_v62 = vunpack.i.l.bf16 %v2845_v58  ;;  %v2269_v55 = vunpack.i.h.bf16 %v2267_v57 }
  0xa2   :  { %1120 = vrot.lane.b32.xlu1 %v2798_v42, %s2548_s25  ;;  %1993 = vmatpush1.bf16.msra.mxu0 %v1992_v60 }
  0xa3   :  { %2531 = vrot.lane.b32.xlu0 %v2525_v45, %s2550_s29  ;;  %v482_v36 = vsel %vm478_vm6, %v2254_v51, %v2263_v62  ;;  %v250_v43 = vsel %vm244_vm0, %v2174_v5, %v2268_v61  ;;  %v251_v5 = vsel %vm244_vm0, %v2268_v61, %v2269_v55 }
  0xa4   :  { %v2277_v11 = vpop.permute.xlu1 %2276  ;;  %v2272_v19 = vpop.permute.xlu0 %2271  ;;  %v2006_v20 = vpack.c.bf16 %v482_v36, %v443_v8  ;;  %v2010_v49 = vpack.c.bf16 %v250_v43, %v209_v4  ;;  %v2028_v43 = vpack.c.bf16 %v251_v5, %v210_v13  ;;  %v2264_v5 = vunpack.i.h.bf16 %v2845_v58 }
  0xa5   :  { %v2278_v35 = vunpack.i.l.bf16 %v2277_v11  ;;  %v2274_v38 = vunpack.i.h.bf16 %v2272_v19  ;;  %v2273_v39 = vunpack.i.l.bf16 %v2272_v19  ;;  %v2279_v56 = vunpack.i.h.bf16 %v2277_v11 }
  0xa6   :  { %1196 = vrot.lane.b32.xlu1 %v2798_v42, %s2550_s29  ;;  %2007 = vmatprep.subr.bf16.mxu1 %v2006_v20 }
  0xa7   :  { %1158 = vrot.lane.b32.xlu0 %v2798_v42, %s2549_s26  ;;  %2009 = vmatpush1.bf16.msra.mxu1 %v2008_v28  ;;  %v519_v6 = vsel %vm517_vm7, %v2273_v39, %v2274_v38  ;;  %v518_v47 = vsel %vm517_vm7, %v2278_v35, %v2273_v39  ;;  %v520_v36 = vsel %vm517_vm7, %v2274_v38, %v2279_v56  ;;  %v2229_v28 = vunpack.i.h.bf16 %v2809_v54 }
  0xa8   :  { %v2287_v37 = vpop.permute.xlu1 %2286  ;;  %v2875_v41 = vpop.permute.xlu0 %2281  ;;  %556 = vmatprep.subr.mxu0 %v519_v6  ;;  %v2234_v39 = vunpack.i.h.bf16 %v2817_v2 }
  0xa9   :  { %v2283_v51 = vunpack.i.l.bf16 %v2875_v41  ;;  %557 = vmatpush1.msra.mxu0 %v518_v47  ;;  %v2288_v60 = vunpack.i.l.bf16 %v2287_v37  ;;  %v2289_v19 = vunpack.i.h.bf16 %v2287_v37  ;;  %v366_v13 = vsel %vm361_vm3, %v2228_v59, %v2229_v28 }
  0xaa   :  { %2011 = vmatprep.subr.bf16.mxu0 %v2010_v49  ;;  %1896 = vmatmul.mubr.msk.f32.vlgmr.msra.gmra.mrb[0].mxu0 %vm536_vm8, %v2873_v48 }
  0xab   :  { %2536 = vrot.lane.b32.xlu0 %v2525_v45, %s2552_s6  ;;  %2013 = vmatpush1.bf16.msra.mxu0 %v2012_v50  ;;  %v252_v1 = vsel %vm244_vm0, %v2269_v55, %v2283_v51  ;;  %v288_v45 = vsel %vm283_vm1, %v2198_v7, %v2199_v52  ;;  %v289_v10 = vsel %vm283_vm1, %v2199_v52, %v2288_v60 }
  0xac   :  { %1234 = vrot.lane.b32.xlu1 %v2798_v42, %s2552_s6  ;;  %v2889_v0 = vpop.permute.xlu1 %2296  ;;  %v2292_v3 = vpop.permute.xlu0 %2291  ;;  %746 = vmatprep.mubr.f32.mxu0 %v2551_v17  ;;  %v327_v42 = vsel %vm322_vm2, %v2203_v29, %v2204_v53  ;;  %v2026_v29 = vpack.c.bf16 %v252_v1, %v211_v14  ;;  %v290_v44 = vsel %vm283_vm1, %v2288_v60, %v2289_v19 }
  0xad   :  { %v2298_v4 = vunpack.i.l.bf16 %v2889_v0  ;;  %v2293_v57 = vunpack.i.l.bf16 %v2292_v3  ;;  %v2294_v63 = vunpack.i.h.bf16 %v2292_v3  ;;  %v2016_v61 = vpack.c.bf16 %v327_v42, %v288_v45 }
  0xae   :  { %v405_v52 = vsel %vm400_vm4, %v2233_v9, %v2234_v39  ;;  %v2259_v42 = vunpack.i.h.bf16 %v2837_v27 }
  0xaf   :  { %v521_v8 = vsel %vm517_vm7, %v2279_v56, %v2298_v4  ;;  %v328_v11 = vsel %vm322_vm2, %v2204_v53, %v2293_v57  ;;  %v329_v6 = vsel %vm322_vm2, %v2293_v57, %v2294_v63  ;;  %v2020_v45 = vpack.c.bf16 %v405_v52, %v366_v13 }
  0xb0   :  { %v2909_v20 = vpop.permute.xlu1 %2306  ;;  %v2911_v7 = vpop.permute.xlu0 %2301  ;;  %627 = vmatprep.subr.mxu1 %v521_v8  ;;  %v2014_v15 = vpack.c.bf16 %v328_v11, %v289_v10  ;;  %v2032_v60 = vpack.c.bf16 %v329_v6, %v290_v44 }
  0xb1   :  { %v2308_v35 = vunpack.i.l.bf16 %v2909_v20  ;;  %v2303_v38 = vunpack.i.l.bf16 %v2911_v7  ;;  %628 = vmatpush1.msra.mxu1 %v520_v36 }
  0xb2   :  { %2015 = vmatprep.subr.bf16.mxu0 %v2014_v15  ;;  %2027 = vmatprep.subr.bf16.mxu1 %v2026_v29 }
  0xb3   :  { %1897 = vmatmul.mubr.msk.f32.vlgmr.msra.gmra.mrb[0].mxu1 %vm536_vm8, %v2873_v48  ;;  %2017 = vmatpush1.bf16.msra.mxu0 %v2016_v61  ;;  %v291_v14 = vsel %vm283_vm1, %v2289_v19, %v2303_v38  ;;  %v330_v12 = vsel %vm322_vm2, %v2294_v63, %v2308_v35 }
  0xb4   :  { %2029 = vmatpush1.bf16.msra.mxu1 %v2028_v43  ;;  %v2317_v47 = vpop.permute.xlu1 %2316  ;;  %v2312_v37 = vpop.permute.xlu0 %2311  ;;  %817 = vmatprep.mubr.f32.mxu1 %v2551_v17  ;;  %v2030_v56 = vpack.c.bf16 %v330_v12, %v291_v14  ;;  %v483_v43 = vsel %vm478_vm6, %v2263_v62, %v2264_v5  ;;  %v2284_v62 = vunpack.i.h.bf16 %v2875_v41 }
  0xb5   :  { %v2318_v49 = vunpack.i.l.bf16 %v2317_v47  ;;  %v2313_v50 = vunpack.i.l.bf16 %v2312_v37  ;;  %v2319_v53 = vunpack.i.h.bf16 %v2317_v47  ;;  %v2314_v55 = vunpack.i.h.bf16 %v2312_v37 }
  0xb6   :  { %2031 = vmatprep.subr.bf16.mxu1 %v2030_v56 }
  0xb7   :  { %v367_v3 = vsel %vm361_vm3, %v2229_v28, %v2313_v50  ;;  %v406_v57 = vsel %vm400_vm4, %v2234_v39, %v2318_v49  ;;  %v407_v8 = vsel %vm400_vm4, %v2318_v49, %v2319_v53  ;;  %v368_v36 = vsel %vm361_vm3, %v2313_v50, %v2314_v55 }
  0xb8   :  { %v2940_v1 = vpop.permute.xlu1 %2326  ;;  %v2942_v54 = vpop.permute.xlu0 %2321  ;;  %v2018_v59 = vpack.c.bf16 %v406_v57, %v367_v3  ;;  %2033 = vmatpush1.bf16.msra.mxu1 %v2032_v60  ;;  %v2036_v29 = vpack.c.bf16 %v407_v8, %v368_v36  ;;  %v444_v39 = vsel %vm439_vm5, %v2258_v46, %v2259_v42  ;;  %v2309_v49 = vunpack.i.h.bf16 %v2909_v20 }
  0xb9   :  { %v2328_v2 = vunpack.i.l.bf16 %v2940_v1  ;;  %v2323_v9 = vunpack.i.l.bf16 %v2942_v54  ;;  %v2024_v27 = vpack.c.bf16 %v483_v43, %v444_v39  ;;  %v2299_v60 = vunpack.i.h.bf16 %v2889_v0 }
  0xba   :  { %2019 = vmatprep.subr.bf16.mxu0 %v2018_v59  ;;  %v253_v36 = vsel %vm244_vm0, %v2283_v51, %v2284_v62  ;;  %v2553_v43 = vmov 0.0|0.0  }
  0xbb   :  { %2021 = vmatpush1.bf16.msra.mxu0 %v2020_v45  ;;  %v369_v10 = vsel %vm361_vm3, %v2314_v55, %v2323_v9  ;;  %v408_v11 = vsel %vm400_vm4, %v2319_v53, %v2328_v2  ;;  %v2304_v53 = vunpack.i.h.bf16 %v2911_v7  ;;  %v522_v7 = vsel %vm517_vm7, %v2298_v4, %v2299_v60 }
  0xbc   :  { %v2337_v19 = vpop.permute.xlu1 %2336  ;;  %v2332_v63 = vpop.permute.xlu0 %2331  ;;  %v2034_v15 = vpack.c.bf16 %v408_v11, %v369_v10  ;;  %v331_v10 = vsel %vm322_vm2, %v2308_v35, %v2309_v49  ;;  %v2329_v11 = vunpack.i.h.bf16 %v2940_v1  ;;  %v2043_v35 = vpack.c.bf16 %v253_v36, %v212_v18 }
  0xbd   :  { %v2338_v61 = vunpack.i.l.bf16 %v2337_v19  ;;  %v2333_v28 = vunpack.i.l.bf16 %v2332_v63  ;;  %v2339_v14 = vunpack.i.h.bf16 %v2337_v19  ;;  %v2334_v44 = vunpack.i.h.bf16 %v2332_v63 }
  0xbe   :  { %2035 = vmatprep.subr.bf16.mxu1 %v2034_v15  ;;  %v292_v19 = vsel %vm283_vm1, %v2303_v38, %v2304_v53  ;;  %v2324_v63 = vunpack.i.h.bf16 %v2942_v54  ;;  %v409_v39 = vsel %vm400_vm4, %v2328_v2, %v2329_v11 }
  0xbf   :  { %2037 = vmatpush1.bf16.msra.mxu1 %v2036_v29  ;;  %v445_v6 = vsel %vm439_vm5, %v2259_v42, %v2333_v28  ;;  %v484_v47 = vsel %vm478_vm6, %v2264_v5, %v2338_v61  ;;  %v485_v50 = vsel %vm478_vm6, %v2338_v61, %v2339_v14  ;;  %v446_v52 = vsel %vm439_vm5, %v2333_v28, %v2334_v44 }
  0xc0   :  { %v2964_v37 = vpop.permute.xlu1 %2346  ;;  %v2966_v12 = vpop.permute.xlu0 %2341  ;;  %v2022_v13 = vpack.c.bf16 %v484_v47, %v445_v6  ;;  %v2040_v45 = vpack.c.bf16 %v485_v50, %v446_v52  ;;  %v2046_v28 = vpack.c.bf16 %v331_v10, %v292_v19  ;;  %v370_v18 = vsel %vm361_vm3, %v2323_v9, %v2324_v63 }
  0xc1   :  { %v2348_v46 = vunpack.i.l.bf16 %v2964_v37  ;;  %v2343_v58 = vunpack.i.l.bf16 %v2966_v12  ;;  %v2349_v1 = vunpack.i.h.bf16 %v2964_v37  ;;  %v2344_v2 = vunpack.i.h.bf16 %v2966_v12 }
  0xc2   :  { %2023 = vmatprep.subr.bf16.mxu0 %v2022_v13 }
  0xc3   :  { %2025 = vmatpush1.bf16.msra.mxu0 %v2024_v27  ;;  %v447_v55 = vsel %vm439_vm5, %v2334_v44, %v2343_v58  ;;  %v486_v56 = vsel %vm478_vm6, %v2339_v14, %v2348_v46  ;;  %v2049_v27 = vpack.c.bf16 %v409_v39, %v370_v18  ;;  %v487_v52 = vsel %vm478_vm6, %v2348_v46, %v2349_v1 }
  0xc4   :  { %v2982_v3 = vpop.permute.xlu1 %2356  ;;  %v2352_v57 = vpop.permute.xlu0 %2351  ;;  %v2038_v59 = vpack.c.bf16 %v486_v56, %v447_v55  ;;  %v448_v53 = vsel %vm439_vm5, %v2343_v58, %v2344_v2 }
  0xc5   :  { %v2358_v42 = vunpack.i.l.bf16 %v2982_v3  ;;  %v2354_v5 = vunpack.i.h.bf16 %v2352_v57  ;;  %v2353_v8 = vunpack.i.l.bf16 %v2352_v57  ;;  %v2359_v36 = vunpack.i.h.bf16 %v2982_v3 }
  0xc6   :  { %2039 = vmatprep.subr.bf16.mxu1 %v2038_v59  ;;  %v2052_v59 = vpack.c.bf16 %v487_v52, %v448_v53 }
  0xc7   :  { %2041 = vmatpush1.bf16.msra.mxu1 %v2040_v45  ;;  %v523_v15 = vsel %vm517_vm7, %v2299_v60, %v2353_v8  ;;  %v525_v41 = vsel %vm517_vm7, %v2354_v5, %v2358_v42  ;;  %v524_v16 = vsel %vm517_vm7, %v2353_v8, %v2354_v5 }
  0xc8   :  { %v3000_v51 = vpop.permute.xlu1 %2366  ;;  %v3002_v20 = vpop.permute.xlu0 %2361  ;;  %698 = vmatprep.subr.mxu0 %v523_v15  ;;  %769 = vmatprep.subr.mxu1 %v525_v41 }
  0xc9   :  { %v2368_v38 = vunpack.i.l.bf16 %v3000_v51  ;;  %v2364_v29 = vunpack.i.h.bf16 %v3002_v20  ;;  %v2363_v61 = vunpack.i.l.bf16 %v3002_v20  ;;  %699 = vmatpush1.msra.mxu0 %v522_v7 }
  0xca   :  { %2042 = vmatprep.subr.bf16.mxu0 %v2553_v43  ;;  %1898 = vmatmul.mubr.msk.f32.vlgmr.msra.gmra.mrb[2].mxu0 %vm536_vm8, %v2873_v48 }
  0xcb   :  { %v970_v0 = vsel %vm244_vm0, %v2368_v38, %v2363_v61  ;;  %770 = vmatpush1.msra.mxu1 %v524_v16  ;;  %2044 = vmatpush3.bf16.msra.mxu0 %v2043_v35  ;;  %v971_v4 = vsel %vm244_vm0, %v2363_v61, %v2364_v29  ;;  %v526_v35 = vsel %vm517_vm7, %v2358_v42, %v2359_v36 }
  0xcc   :  { %v2056_v14 = vpack.c.bf16 %v970_v0, %v930_v23  ;;  %v3030_v44 = vpop.permute.xlu1 %2376  ;;  %v3032_v54 = vpop.permute.xlu0 %2371  ;;  %2045 = vmatprep.subr.bf16.mxu0 %v2553_v43  ;;  %v2054_v9 = vpack.c.bf16 %v971_v4, %v931_v25  ;;  %1899 = vmatmul.mubr.msk.f32.vlgmr.msra.gmra.mrb[2].mxu1 %vm536_vm8, %v2873_v48 }
  0xcd   :  { %v2379_v6 = vunpack.i.h.bf16 %v3030_v44  ;;  %v2378_v47 = vunpack.i.l.bf16 %v3030_v44  ;;  %v2374_v13 = vunpack.i.h.bf16 %v3032_v54  ;;  %v2373_v23 = vunpack.i.l.bf16 %v3032_v54  ;;  %1954 = vmatprep.mubr.msk.f32.mxu0 %vm2554_vm9, %v2551_v17  ;;  %1318 = vmatprep.mubr.f32.mxu1 %v2551_v17 }
  0xce   :  { %2055 = vmatprep.subr.bf16.mxu1 %v2054_v9 }
  0xcf   :  { %2047 = vmatpush3.bf16.msra.mxu0 %v2046_v28  ;;  %2057 = vmatpush1.bf16.msra.mxu1 %v2056_v14  ;;  %v1009_v21 = vsel %vm283_vm1, %v2373_v23, %v2374_v13  ;;  %v1047_v25 = vsel %vm322_vm2, %v2378_v47, %v2379_v6 }
  0xd0   :  { %v3052_v62 = vpop.permute.xlu1 %2386  ;;  %v3054_v49 = vpop.permute.xlu0 %2381  ;;  %2048 = vmatprep.subr.bf16.mxu0 %v2553_v43  ;;  %v2058_v50 = vpack.c.bf16 %v1047_v25, %v1009_v21 }
  0xd1   :  { %v2388_v55 = vunpack.i.l.bf16 %v3052_v62  ;;  %v2383_v56 = vunpack.i.l.bf16 %v3054_v49  ;;  %v2384_v52 = vunpack.i.h.bf16 %v3054_v49 }
  0xd2   :  { %2059 = vmatprep.subr.bf16.mxu1 %v2058_v50  ;;  %v2389_v50 = vunpack.i.h.bf16 %v3052_v62 }
  0xd3   :  { %v1046_v60 = vsel %vm322_vm2, %v2388_v55, %v2378_v47  ;;  %v1008_v57 = vsel %vm283_vm1, %v2383_v56, %v2373_v23  ;;  %2050 = vmatpush3.bf16.msra.mxu0 %v2049_v27  ;;  %v2369_v47 = vunpack.i.h.bf16 %v3000_v51  ;;  %v1010_v49 = vsel %vm283_vm1, %v2374_v13, %v2384_v52 }
  0xd4   :  { %v2060_v45 = vpack.c.bf16 %v1046_v60, %v1008_v57  ;;  %v3067_v5 = vpop.permute.xlu1 %2396  ;;  %v3069_v37 = vpop.permute.xlu0 %2391  ;;  %2051 = vmatprep.subr.bf16.mxu0 %v2553_v43  ;;  %v1048_v62 = vsel %vm322_vm2, %v2379_v6, %v2389_v50 }
  0xd5   :  { %v2399_v12 = vunpack.i.h.bf16 %v3067_v5  ;;  %v2398_v46 = vunpack.i.l.bf16 %v3067_v5  ;;  %v2394_v58 = vunpack.i.h.bf16 %v3069_v37  ;;  %v2393_v8 = vunpack.i.l.bf16 %v3069_v37 }
  0xd6   :  { %2061 = vmatpush1.bf16.msra.mxu1 %v2060_v45  ;;  %v972_v51 = vsel %vm244_vm0, %v2364_v29, %v2369_v47  ;;  %v2076_v6 = vpack.c.bf16 %v1048_v62, %v1010_v49 }
  0xd7   :  { %2053 = vmatpush3.bf16.msra.mxu0 %v2052_v59  ;;  %v1085_v10 = vsel %vm361_vm3, %v2393_v8, %v2394_v58  ;;  %v1123_v11 = vsel %vm400_vm4, %v2398_v46, %v2399_v12  ;;  %v2072_v59 = vpack.c.bf16 %v972_v51, %v932_v26 }
  0xd8   :  { %v3083_v19 = vpop.permute.xlu1 %2406  ;;  %v3085_v63 = vpop.permute.xlu0 %2401  ;;  %1952 = vmatprep.subr.mxu0 %v2551_v17  ;;  %v2062_v15 = vpack.c.bf16 %v1123_v11, %v1085_v10 }
  0xd9   :  { %v2408_v41 = vunpack.i.l.bf16 %v3083_v19  ;;  %v2403_v7 = vunpack.i.l.bf16 %v3085_v63 }
  0xda   :  { %2063 = vmatprep.subr.bf16.mxu1 %v2062_v15 }
  0xdb   :  { %v1122_v38 = vsel %vm400_vm4, %v2408_v41, %v2398_v46  ;;  %v1084_v61 = vsel %vm361_vm3, %v2403_v7, %v2393_v8  ;;  %1953 = vmatpush3.msra.mxu0 %v526_v35 }
  0xdc   :  { %v2064_v28 = vpack.c.bf16 %v1122_v38, %v1084_v61  ;;  %v3095_v39 = vpop.permute.xlu1 %2416  ;;  %v3097_v16 = vpop.permute.xlu0 %2411  ;;  %1955 = vmatmul.mubr.msk.f32.vlgmr.msra.gmra.mrb[4].mxu0 %vm536_vm8, %v2873_v48 }
  0xdd   :  { %v2419_v18 = vunpack.i.h.bf16 %v3095_v39  ;;  %v2418_v0 = vunpack.i.l.bf16 %v3095_v39  ;;  %v2414_v3 = vunpack.i.h.bf16 %v3097_v16  ;;  %v2413_v42 = vunpack.i.l.bf16 %v3097_v16  ;;  %1389 = vmatprep.mubr.f32.mxu0 %v2551_v17 }
  0xde   :  { %2065 = vmatpush1.bf16.msra.mxu1 %v2064_v28 }
  0xdf   :  { %v1161_v4 = vsel %vm439_vm5, %v2413_v42, %v2414_v3  ;;  %v1199_v1 = vsel %vm478_vm6, %v2418_v0, %v2419_v18 }
  0xe0   :  { %v3112_v2 = vpop.permute.xlu1 %2426  ;;  %v3114_v14 = vpop.permute.xlu0 %2421  ;;  %v2066_v9 = vpack.c.bf16 %v1199_v1, %v1161_v4 }
  0xe1   :  { %v2428_v23 = vunpack.i.l.bf16 %v3112_v2  ;;  %v2423_v21 = vunpack.i.l.bf16 %v3114_v14  ;;  %v2429_v37 = vunpack.i.h.bf16 %v3112_v2 }
  0xe2   :  { %2067 = vmatprep.subr.bf16.mxu1 %v2066_v9 }
  0xe3   :  { %v1198_v25 = vsel %vm478_vm6, %v2428_v23, %v2418_v0  ;;  %v1160_v27 = vsel %vm439_vm5, %v2423_v21, %v2413_v42  ;;  %v2404_v21 = vunpack.i.h.bf16 %v3085_v63 }
  0xe4   :  { %v2068_v53 = vpack.c.bf16 %v1198_v25, %v1160_v27  ;;  %v3123_v55 = vpop.permute.xlu1 %2436  ;;  %v2432_v56 = vpop.permute.xlu0 %2431 }
  0xe5   :  { %v2433_v60 = vunpack.i.l.bf16 %v2432_v56  ;;  %v2438_v29 = vunpack.i.l.bf16 %v3123_v55  ;;  %v2434_v8 = vunpack.i.h.bf16 %v2432_v56  ;;  %v1086_v51 = vsel %vm361_vm3, %v2394_v58, %v2404_v21 }
  0xe6   :  { %2069 = vmatpush1.bf16.msra.mxu1 %v2068_v53 }
  0xe7   :  { %v973_v57 = vsel %vm244_vm0, %v2369_v47, %v2433_v60  ;;  %v975_v41 = vsel %vm244_vm0, %v2434_v8, %v2438_v29  ;;  %v974_v7 = vsel %vm244_vm0, %v2433_v60, %v2434_v8  ;;  %v2409_v47 = vunpack.i.h.bf16 %v3083_v19 }
  0xe8   :  { %v2447_v45 = vpop.permute.xlu1 %2446  ;;  %v2442_v46 = vpop.permute.xlu0 %2441  ;;  %v2070_v20 = vpack.c.bf16 %v973_v57, %v933_v24  ;;  %v2086_v42 = vpack.c.bf16 %v975_v41, %v935_v34  ;;  %v2088_v4 = vpack.c.bf16 %v974_v7, %v934_v33  ;;  %v1200_v7 = vsel %vm478_vm6, %v2419_v18, %v2429_v37 }
  0xe9   :  { %v2448_v36 = vunpack.i.l.bf16 %v2447_v45  ;;  %v2443_v10 = vunpack.i.l.bf16 %v2442_v46  ;;  %v2449_v35 = vunpack.i.h.bf16 %v2447_v45  ;;  %v2444_v38 = vunpack.i.h.bf16 %v2442_v46 }
  0xea   :  { %2071 = vmatprep.subr.bf16.mxu0 %v2070_v20  ;;  %v1124_v63 = vsel %vm400_vm4, %v2399_v12, %v2409_v47  ;;  %v2424_v20 = vunpack.i.h.bf16 %v3114_v14 }
  0xeb   :  { %2073 = vmatpush1.bf16.msra.mxu0 %v2072_v59  ;;  %v1011_v26 = vsel %vm283_vm1, %v2384_v52, %v2443_v10  ;;  %v1049_v44 = vsel %vm322_vm2, %v2389_v50, %v2448_v36  ;;  %v1050_v34 = vsel %vm322_vm2, %v2448_v36, %v2449_v35  ;;  %v1012_v30 = vsel %vm283_vm1, %v2443_v10, %v2444_v38 }
  0xec   :  { %v3142_v54 = vpop.permute.xlu1 %2456  ;;  %v3144_v13 = vpop.permute.xlu0 %2451  ;;  %v2074_v11 = vpack.c.bf16 %v1049_v44, %v1011_v26  ;;  %v2092_v53 = vpack.c.bf16 %v1050_v34, %v1012_v30  ;;  %v2080_v46 = vpack.c.bf16 %v1124_v63, %v1086_v51 }
  0xed   :  { %v2458_v22 = vunpack.i.l.bf16 %v3142_v54  ;;  %v2454_v24 = vunpack.i.h.bf16 %v3144_v13  ;;  %v2453_v15 = vunpack.i.l.bf16 %v3144_v13  ;;  %v2459_v30 = vunpack.i.h.bf16 %v3142_v54 }
  0xee   :  { %2075 = vmatprep.subr.bf16.mxu0 %v2074_v11 }
  0xef   :  { %2077 = vmatpush1.bf16.msra.mxu0 %v2076_v6  ;;  %v1237_v61 = vsel %vm517_vm7, %v2453_v15, %v2454_v24  ;;  %v1236_v28 = vsel %vm517_vm7, %v2458_v22, %v2453_v15  ;;  %v1238_v54 = vsel %vm517_vm7, %v2454_v24, %v2459_v30 }
  0xf0   :  { %v3157_v0 = vpop.permute.xlu1 %2466  ;;  %1270 = vmatprep.subr.mxu1 %v1237_v61 }
  0xf1   :  { %v2468_v1 = vunpack.i.l.bf16 %v3157_v0  ;;  %v3164_v9 = vpop.permute.xlu0 %2461  ;;  %1271 = vmatpush1.msra.mxu1 %v1236_v28  ;;  %v2469_v63 = vunpack.i.h.bf16 %v3157_v0 }
  0xf2   :  { %v2463_v23 = vunpack.i.l.bf16 %v3164_v9  ;;  %2087 = vmatprep.subr.bf16.mxu1 %v2086_v42  ;;  %1906 = vmatmul.mubr.msk.f32.vlgmr.msra.gmra.mrb[4].mxu1 %vm536_vm8, %v2873_v48 }
  0xf3   :  { %2089 = vmatpush1.bf16.msra.mxu1 %v2088_v4  ;;  %v1051_v33 = vsel %vm322_vm2, %v2449_v35, %v2468_v1  ;;  %1460 = vmatprep.mubr.f32.mxu1 %v2551_v17  ;;  %v1162_v35 = vsel %vm439_vm5, %v2414_v3, %v2424_v20  ;;  %v1052_v13 = vsel %vm322_vm2, %v2468_v1, %v2469_v63 }
  0xf4   :  { %v2477_v19 = vpop.permute.xlu1 %2476  ;;  %v1013_v25 = vsel %vm283_vm1, %v2444_v38, %v2463_v23 }
  0xf5   :  { %v2478_v27 = vunpack.i.l.bf16 %v2477_v19  ;;  %v2472_v50 = vpop.permute.xlu0 %2471  ;;  %v2090_v52 = vpack.c.bf16 %v1051_v33, %v1013_v25  ;;  %v2479_v60 = vunpack.i.h.bf16 %v2477_v19 }
  0xf6   :  { %v2473_v56 = vunpack.i.l.bf16 %v2472_v50  ;;  %v2474_v57 = vunpack.i.h.bf16 %v2472_v50 }
  0xf7   :  { %2091 = vmatprep.subr.bf16.mxu1 %v2090_v52  ;;  %v1125_v59 = vsel %vm400_vm4, %v2409_v47, %v2478_v27  ;;  %v1126_v8 = vsel %vm400_vm4, %v2478_v27, %v2479_v60  ;;  %v2084_v47 = vpack.c.bf16 %v1200_v7, %v1162_v35 }
  0xf8   :  { %2093 = vmatpush1.bf16.msra.mxu1 %v2092_v53  ;;  %v3187_v62 = vpop.permute.xlu1 %2486  ;;  %v1087_v49 = vsel %vm361_vm3, %v2404_v21, %v2473_v56  ;;  %v1088_v36 = vsel %vm361_vm3, %v2473_v56, %v2474_v57  ;;  %v2439_v21 = vunpack.i.h.bf16 %v3123_v55  ;;  %v2464_v53 = vunpack.i.h.bf16 %v3164_v9 }
  0xf9   :  { %v2488_v5 = vunpack.i.l.bf16 %v3187_v62  ;;  %v3191_v45 = vpop.permute.xlu0 %2481  ;;  %v2078_v12 = vpack.c.bf16 %v1125_v59, %v1087_v49  ;;  %v2096_v14 = vpack.c.bf16 %v1126_v8, %v1088_v36 }
  0xfa   :  { %v2483_v58 = vunpack.i.l.bf16 %v3191_v45  ;;  %v976_v52 = vsel %vm244_vm0, %v2438_v29, %v2439_v21  ;;  %v1014_v24 = vsel %vm283_vm1, %v2463_v23, %v2464_v53 }
  0xfb   :  { %2079 = vmatprep.subr.bf16.mxu0 %v2078_v12  ;;  %v1127_v10 = vsel %vm400_vm4, %v2479_v60, %v2488_v5  ;;  %v2104_v29 = vpack.c.bf16 %v976_v52, %v2716_v31  ;;  %v2489_v31 = vunpack.i.h.bf16 %v3187_v62 }
  0xfc   :  { %2081 = vmatpush1.bf16.msra.mxu0 %v2080_v46  ;;  %v2497_v26 = vpop.permute.xlu1 %2496  ;;  %v1089_v44 = vsel %vm361_vm3, %v2474_v57, %v2483_v58 }
  0xfd   :  { %v2499_v2 = vunpack.i.h.bf16 %v2497_v26  ;;  %v2498_v6 = vunpack.i.l.bf16 %v2497_v26  ;;  %v2492_v11 = vpop.permute.xlu0 %2491  ;;  %v2094_v22 = vpack.c.bf16 %v1127_v10, %v1089_v44  ;;  %v2108_v10 = vpack.c.bf16 %v1052_v13, %v1014_v24 }
  0xfe   :  { %v2494_v15 = vunpack.i.h.bf16 %v2492_v11  ;;  %v2493_v41 = vunpack.i.l.bf16 %v2492_v11  ;;  %v1128_v11 = vsel %vm400_vm4, %v2488_v5, %v2489_v31 }
  0xff   :  { %2095 = vmatprep.subr.bf16.mxu1 %v2094_v22  ;;  %v1201_v38 = vsel %vm478_vm6, %v2429_v37, %v2498_v6  ;;  %v1202_v42 = vsel %vm478_vm6, %v2498_v6, %v2499_v2 }
 0x100   :  { %2097 = vmatpush1.bf16.msra.mxu1 %v2096_v14  ;;  %v3211_v61 = vpop.permute.xlu1 %1190  ;;  %v1163_v28 = vsel %vm439_vm5, %v2424_v20, %v2493_v41  ;;  %v1164_v4 = vsel %vm439_vm5, %v2493_v41, %v2494_v15 }
 0x101   :  { %v1203_v39 = vsel %vm478_vm6, %v2499_v2, %v3211_v61  ;;  %v3218_v18 = vpop.permute.xlu0 %1152  ;;  %v2082_v16 = vpack.c.bf16 %v1201_v38, %v1163_v28  ;;  %v2100_v33 = vpack.c.bf16 %v1202_v42, %v1164_v4 }
 0x102   :  { %v1165_v3 = vsel %vm439_vm5, %v2494_v15, %v3218_v18 }
 0x103   :  { %v2098_v34 = vpack.c.bf16 %v1203_v39, %v1165_v3  ;;  %2083 = vmatprep.subr.bf16.mxu0 %v2082_v16 }
 0x104   :  { %2085 = vmatpush1.bf16.msra.mxu0 %v2084_v47  ;;  %v2507_v19 = vpop.permute.xlu1 %2506 }
 0x105   :  { %v2508_v25 = vunpack.i.l.bf16 %v2507_v19  ;;  %v2502_v27 = vpop.permute.xlu0 %2501  ;;  %2099 = vmatprep.subr.bf16.mxu1 %v2098_v34  ;;  %v2509_v12 = vunpack.i.h.bf16 %v2507_v19 }
 0x106   :  { %v2503_v50 = vunpack.i.l.bf16 %v2502_v27  ;;  %2101 = vmatpush1.bf16.msra.mxu1 %v2100_v33  ;;  %v2504_v57 = vunpack.i.h.bf16 %v2502_v27 }
 0x107   :  { %v1239_v56 = vsel %vm517_vm7, %v2459_v30, %v2508_v25  ;;  %v1240_v6 = vsel %vm517_vm7, %v2508_v25, %v2509_v12 }
 0x108   :  { %v2517_v51 = vpop.permute.xlu1 %2516  ;;  %1341 = vmatprep.subr.mxu0 %v1239_v56  ;;  %v977_v60 = vsel %vm244_vm0, %v2439_v21, %v2503_v50  ;;  %v978_v0 = vsel %vm244_vm0, %v2503_v50, %v2504_v57 }
 0x109   :  { %v2518_v59 = vunpack.i.l.bf16 %v2517_v51  ;;  %v2512_v49 = vpop.permute.xlu0 %2511  ;;  %1342 = vmatpush1.msra.mxu0 %v1238_v54  ;;  %v2102_v55 = vpack.c.bf16 %v977_v60, %v2718_v32  ;;  %v2484_v32 = vunpack.i.h.bf16 %v3191_v45  ;;  %v2519_v1 = vunpack.i.h.bf16 %v2517_v51 }
 0x10a   :  { %v2513_v46 = vunpack.i.l.bf16 %v2512_v49  ;;  %1907 = vmatmul.mubr.msk.f32.vlgmr.msra.gmra.mrb[6].mxu0 %vm536_vm8, %v2873_v48  ;;  %v2514_v36 = vunpack.i.h.bf16 %v2512_v49  ;;  %v2119_v22 = vpack.c.bf16 %v978_v0, %v2796_v40 }
 0x10b   :  { %2103 = vmatprep.subr.bf16.mxu0 %v2102_v55  ;;  %v1053_v37 = vsel %vm322_vm2, %v2469_v63, %v2518_v59  ;;  %1531 = vmatprep.mubr.f32.mxu0 %v2551_v17  ;;  %v1090_v15 = vsel %vm361_vm3, %v2483_v58, %v2484_v32  ;;  %v1054_v41 = vsel %vm322_vm2, %v2518_v59, %v2519_v1 }
 0x10c   :  { %2105 = vmatpush1.bf16.msra.mxu0 %v2104_v29  ;;  %v2522_v20 = vpop.permute.xlu1 %2521  ;;  %v1015_v8 = vsel %vm283_vm1, %v2464_v53, %v2513_v46  ;;  %v1016_v7 = vsel %vm283_vm1, %v2513_v46, %v2514_v36  ;;  %v2112_v38 = vpack.c.bf16 %v1128_v11, %v1090_v15 }
 0x10d   :  { %v3250_v9 = vpop.permute.xlu0 %1228  ;;  %v2106_v23 = vpack.c.bf16 %v1053_v37, %v1015_v8  ;;  %v2523_v26 = vunpack.i.l.bf16 %v2522_v20  ;;  %v2524_v2 = vunpack.i.h.bf16 %v2522_v20  ;;  %v2122_v28 = vpack.c.bf16 %v1054_v41, %v1016_v7 }
 0x10e   :  { %v1241_v44 = vsel %vm517_vm7, %v2509_v12, %v3250_v9 }
 0x10f   :  { %1412 = vmatprep.subr.mxu1 %v1241_v44  ;;  %2107 = vmatprep.subr.bf16.mxu0 %v2106_v23  ;;  %v1091_v40 = vsel %vm361_vm3, %v2484_v32, %v2523_v26  ;;  %v1092_v58 = vsel %vm361_vm3, %v2523_v26, %v2524_v2 }
 0x110   :  { %1413 = vmatpush1.msra.mxu1 %v1240_v6  ;;  %2109 = vmatpush1.bf16.msra.mxu0 %v2108_v10  ;;  %v2527_v14 = vpop.permute.xlu1 %2526 }
 0x111   :  { %v1119_v35 = vpop.permute.xlu0 %1118  ;;  %1908 = vmatmul.mubr.msk.f32.vlgmr.msra.gmra.mrb[6].mxu1 %vm536_vm8, %v2873_v48  ;;  %2118 = vmatprep.subr.bf16.mxu1 %v2553_v43  ;;  %v2529_v62 = vunpack.i.h.bf16 %v2527_v14  ;;  %v2528_v42 = vunpack.i.l.bf16 %v2527_v14 }
 0x112   :  { %v1129_v5 = vsel %vm400_vm4, %v2489_v31, %v1119_v35  ;;  %2120 = vmatpush3.bf16.msra.mxu1 %v2119_v22  ;;  %1975 = vmatprep.mubr.msk.f32.mxu1 %vm2554_vm9, %v2551_v17 }
 0x113   :  { %v2110_v45 = vpack.c.bf16 %v1129_v5, %v1091_v40  ;;  %2121 = vmatprep.subr.bf16.mxu1 %v2553_v43  ;;  %v1167_v34 = vsel %vm439_vm5, %v2528_v42, %v2529_v62  ;;  %v1166_v30 = vsel %vm439_vm5, %v3218_v18, %v2528_v42 }
 0x114   :  { %v1121_v4 = vpop.permute.xlu1 %1120 }
 0x115   :  { %v1130_v39 = vsel %vm400_vm4, %v1119_v35, %v1121_v4  ;;  %v2532_v16 = vpop.permute.xlu0 %2531  ;;  %2111 = vmatprep.subr.bf16.mxu0 %v2110_v45 }
 0x116   :  { %v2125_v47 = vpack.c.bf16 %v1130_v39, %v1092_v58  ;;  %v2534_v3 = vunpack.i.h.bf16 %v2532_v16  ;;  %v2533_v21 = vunpack.i.l.bf16 %v2532_v16  ;;  %2113 = vmatpush1.bf16.msra.mxu0 %v2112_v38  ;;  %2123 = vmatpush3.bf16.msra.mxu1 %v2122_v28 }
 0x117   :  { %2124 = vmatprep.subr.bf16.mxu1 %v2553_v43 }
 0x118   :  { %v1204_v33 = vsel %vm478_vm6, %v3211_v61, %v2533_v21  ;;  %v1197_v19 = vpop.permute.xlu1 %1196  ;;  %v1205_v25 = vsel %vm478_vm6, %v2533_v21, %v2534_v3 }
 0x119   :  { %v2116_v27 = vpack.c.bf16 %v1204_v33, %v1166_v30  ;;  %v1206_v50 = vsel %vm478_vm6, %v2534_v3, %v1197_v19  ;;  %v1159_v52 = vpop.permute.xlu0 %1158  ;;  %v2114_v63 = vpack.c.bf16 %v1205_v25, %v1167_v34 }
 0x11a   :  { %v1168_v53 = vsel %vm439_vm5, %v2529_v62, %v1159_v52  ;;  %2126 = vmatpush3.bf16.msra.mxu1 %v2125_v47 }
 0x11b   :  { %v2128_v56 = vpack.c.bf16 %v1206_v50, %v1168_v53  ;;  %2115 = vmatprep.subr.bf16.mxu0 %v2114_v63  ;;  %2127 = vmatprep.subr.bf16.mxu1 %v2553_v43  ;;  %v18_v43 = vlaneseq }
 0x11c   :  { %2117 = vmatpush1.bf16.msra.mxu0 %v2116_v27 }
 0x11d   :  { %v2537_v18 = vpop.permute.xlu0 %2536  ;;  %v3293_v49 = vand.u32 127, %v18_v43 }
 0x11e   :  { %v2539_v51 = vunpack.i.h.bf16 %v2537_v18  ;;  %v2538_v54 = vunpack.i.l.bf16 %v2537_v18  ;;  %2129 = vmatpush3.bf16.msra.mxu1 %v2128_v56  ;;  %v1235_v61 = vpop.permute.xlu1 %1234 }
 0x11f   :  { %1973 = vmatprep.subr.mxu1 %v2551_v17  ;;  %v20_v55 = vadd.s32 128, %v3293_v49  ;;  %v3297_v29 = vmul.u32.u64.low 3817748708, %v3293_v49  ;;  %v3298_v12 = vmul.u32.u64.high 3817748708, %v3293_v49, %v3297_v29  ;;  %v21_v24 = vadd.s32 256, %v3293_v49 }
 0x120   :  { %v1244_v60 = vsel %vm517_vm7, %v2539_v51, %v1235_v61  ;;  %v1243_v57 = vsel %vm517_vm7, %v2538_v54, %v2539_v51  ;;  %v1242_v59 = vsel %vm517_vm7, %v3250_v9, %v2538_v54  ;;  %v22_v37 = vadd.s32 384, %v3293_v49 }
 0x121   :  { %1483 = vmatprep.subr.mxu0 %v1243_v57  ;;  %v3300_v46 = vmul.u32.u64.low 3817748708, %v20_v55  ;;  %v3301_v13 = vmul.u32.u64.high 3817748708, %v20_v55, %v3300_v46  ;;  %v34_v31 = vshrl.u32 %v3298_v12, 5  ;;  %v23_v7 = vadd.s32 512, %v3293_v49 }
 0x122   :  { %1484 = vmatpush1.msra.mxu0 %v1242_v59  ;;  %1974 = vmatpush3.msra.mxu1 %v1244_v60  ;;  %v3307_v32 = vmul.u32.u64.low 3817748708, %v21_v24  ;;  %v3308_v20 = vmul.u32.u64.high 3817748708, %v21_v24, %v3307_v32  ;;  %v3310_v8 = vmul.u32.u64.low 3817748708, %v22_v37  ;;  %v3311_v0 = vmul.u32.u64.high 3817748708, %v22_v37, %v3310_v8 }
 0x123   :  { %1909 = vmatmul.mubr.msk.f32.vlgmr.msra.gmra.mrb[8].mxu0 %vm536_vm8, %v2873_v48  ;;  %1976 = vmatmul.mubr.msk.f32.vlgmr.msra.gmra.mrb[8].mxu1 %vm536_vm8, %v2873_v48  ;;  %v45_v48 = vshrl.u32 %v3301_v13, 5  ;;  %v35_v1 = vmul.u32 36, %v34_v31  ;;  %v24_v35 = vadd.s32 640, %v3293_v49  ;;  %v25_v62 = vadd.s32 768, %v3293_v49 }
 0x124   :  { %v56_v10 = vshrl.u32 %v3308_v20, 5  ;;  %v67_v26 = vshrl.u32 %v3311_v0, 5  ;;  %v26_v5 = vadd.s32 896, %v3293_v49  ;;  %vm903_vm8 = vcmask 1043456  }
 0x125   :  { %v46_v36 = vmul.u32 36, %v45_v48  ;;  %v36_v9 = vsub.s32 %v3293_v49, %v35_v1  ;;  %v3327_v28 = vmul.u32.u64.low 3817748708, %v23_v7  ;;  %v3328_v42 = vmul.u32.u64.high 3817748708, %v23_v7, %v3327_v28 }
 0x126   :  { %v57_v44 = vmul.u32 36, %v56_v10  ;;  %v68_v6 = vmul.u32 36, %v67_v26  ;;  %v27_v13 = vadd.s32 1024, %v3293_v49 }
 0x127   :  { %v47_v23 = vsub.s32 %v20_v55, %v46_v36  ;;  %vm127_vm10 = vcmp.ne.s32.totalorder %v36_v9, 0  ;;  %vm136_vm11 = vcmp.lt.s32.totalorder %v36_v9, 0  ;;  %v154_v2 = vadd.s32 36, %v36_v9 }
 0x128   :  { %vm145_vm14 = vmand %vm136_vm11, %vm127_vm10  ;;  %v58_v22 = vsub.s32 %v21_v24, %v57_v44  ;;  %v69_v15 = vsub.s32 %v22_v37, %v68_v6  ;;  %v3337_v16 = vmul.u32.u64.low 3817748708, %v24_v35  ;;  %v3338_v47 = vmul.u32.u64.high 3817748708, %v24_v35, %v3337_v16 }
 0x129   :  { %vm128_vm12 = vcmp.ne.s32.totalorder %v47_v23, 0  ;;  %vm137_vm13 = vcmp.lt.s32.totalorder %v47_v23, 0  ;;  %v155_v11 = vadd.s32 36, %v47_v23  ;;  %v163_v14 = vsel %vm145_vm14, %v154_v2, %v36_v9 }
 0x12a   :  { %vm146_vm15 = vmand %vm137_vm13, %vm128_vm12  ;;  %vm172_vm0 = vcmp.lt.s32.totalorder %v163_v14, 32  ;;  %vm129_vm1 = vcmp.ne.s32.totalorder %v58_v22, 0  ;;  %vm138_vm2 = vcmp.lt.s32.totalorder %v58_v22, 0  ;;  %vm130_vm4 = vcmp.ne.s32.totalorder %v69_v15, 0 }
 0x12b   :  { %v164_v41 = vsel %vm146_vm15, %v155_v11, %v47_v23  ;;  %vm139_vm5 = vcmp.lt.s32.totalorder %v69_v15, 0  ;;  %v156_v40 = vadd.s32 36, %v58_v22  ;;  %v3321_v45 = vsel %vm172_vm0, 1.0, %v2551_v17  ;;  %vm3323_vm6 = vmand %vm138_vm2, %vm129_vm1 }
 0x12c   :  { %vm173_vm3 = vcmp.lt.s32.totalorder %v164_v41, 32  ;;  %v157_v38 = vadd.s32 36, %v69_v15  ;;  %vm3333_vm7 = vmand %vm139_vm5, %vm130_vm4  ;;  %v3342_v21 = vmul.u32.u64.low 3817748708, %v25_v62  ;;  %v3343_v34 = vmul.u32.u64.high 3817748708, %v25_v62, %v3342_v21 }
 0x12d   :  { %v3331_v4 = vsel %vm173_vm3, 1.0, %v2551_v17  ;;  %v165_v19 = vsel %vm3323_vm6, %v156_v40, %v58_v22  ;;  %v3351_v25 = vmul.u32.u64.low 3817748708, %v26_v5  ;;  %v3352_v27 = vmul.u32.u64.high 3817748708, %v26_v5, %v3351_v25 }
 0x12e   :  { %v166_v52 = vsel %vm3333_vm7, %v157_v38, %v69_v15  ;;  %vm174_vm9 = vcmp.lt.s32.totalorder %v165_v19, 32  ;;  %v78_v18 = vshrl.u32 %v3328_v42, 5  ;;  %v89_v54 = vshrl.u32 %v3338_v47, 5 }
 0x12f   :  { %vm175_vm10 = vcmp.lt.s32.totalorder %v166_v52, 32  ;;  %v3362_v51 = vsel %vm174_vm9, 1.0, %v2551_v17  ;;  %v100_v60 = vshrl.u32 %v3343_v34, 5  ;;  %v111_v59 = vshrl.u32 %v3352_v27, 5 }
 0x130   :  { %v3366_v61 = vsel %vm175_vm10, 1.0, %v2551_v17  ;;  %v79_v29 = vmul.u32 36, %v78_v18  ;;  %v90_v46 = vmul.u32 36, %v89_v54 }
 0x131   :  { %v101_v37 = vmul.u32 36, %v100_v60  ;;  %v112_v32 = vmul.u32 36, %v111_v59 }
 0x132   :  { %v80_v20 = vsub.s32 %v23_v7, %v79_v29  ;;  %v91_v0 = vsub.s32 %v24_v35, %v90_v46  ;;  %v3381_v1 = vmul.u32.u64.low 3817748708, %v27_v13  ;;  %v3382_v36 = vmul.u32.u64.high 3817748708, %v27_v13, %v3381_v1 }
 0x133   :  { %v102_v9 = vsub.s32 %v25_v62, %v101_v37  ;;  %v113_v23 = vsub.s32 %v26_v5, %v112_v32 }
 0x134   :  { %vm131_vm11 = vcmp.ne.s32.totalorder %v80_v20, 0  ;;  %vm140_vm12 = vcmp.lt.s32.totalorder %v80_v20, 0  ;;  %vm132_vm13 = vcmp.ne.s32.totalorder %v91_v0, 0  ;;  %vm141_vm14 = vcmp.lt.s32.totalorder %v91_v0, 0 }
 0x135   :  { %v158_v49 = vadd.s32 36, %v80_v20  ;;  %vm133_vm15 = vcmp.ne.s32.totalorder %v102_v9, 0  ;;  %vm142_vm0 = vcmp.lt.s32.totalorder %v102_v9, 0  ;;  %vm149_vm1 = vmand %vm140_vm12, %vm131_vm11  ;;  %v159_v10 = vadd.s32 36, %v91_v0 }
 0x136   :  { %vm134_vm2 = vcmp.ne.s32.totalorder %v113_v23, 0  ;;  %vm143_vm3 = vcmp.lt.s32.totalorder %v113_v23, 0  ;;  %vm150_vm4 = vmand %vm141_vm14, %vm132_vm13  ;;  %v160_v26 = vadd.s32 36, %v102_v9  ;;  %v161_v44 = vadd.s32 36, %v113_v23 }
 0x137   :  { %vm151_vm5 = vmand %vm142_vm0, %vm133_vm15  ;;  %v122_v2 = vshrl.u32 %v3382_v36, 5  ;;  %v167_v6 = vsel %vm149_vm1, %v158_v49, %v80_v20  ;;  %v168_v11 = vsel %vm150_vm4, %v159_v10, %v91_v0 }
 0x138   :  { %vm152_vm6 = vmand %vm143_vm3, %vm134_vm2  ;;  %v169_v22 = vsel %vm151_vm5, %v160_v26, %v102_v9  ;;  %vm176_vm7 = vcmp.lt.s32.totalorder %v167_v6, 32  ;;  %vm177_vm9 = vcmp.lt.s32.totalorder %v168_v11, 32 }
 0x139   :  { %v170_v14 = vsel %vm152_vm6, %v161_v44, %v113_v23  ;;  %v123_v15 = vmul.u32 36, %v122_v2  ;;  %vm178_vm10 = vcmp.lt.s32.totalorder %v169_v22, 32  ;;  %v3386_v41 = vsel %vm176_vm7, 1.0, %v2551_v17 }
 0x13a   :  { %vm179_vm11 = vcmp.lt.s32.totalorder %v170_v14, 32  ;;  %v3389_v7 = vsel %vm177_vm9, 1.0, %v2551_v17  ;;  %v3394_v40 = vsel %vm178_vm10, 1.0, %v2551_v17 }
 0x13b   :  { %v124_v35 = vsub.s32 %v27_v13, %v123_v15  ;;  %v3401_v38 = vsel %vm179_vm11, 1.0, %v2551_v17 }
 0x13d   :  { %vm135_vm12 = vcmp.ne.s32.totalorder %v124_v35, 0  ;;  %vm144_vm13 = vcmp.lt.s32.totalorder %v124_v35, 0  ;;  %v162_v27 = vadd.s32 36, %v124_v35 }
 0x13e   :  { %vm153_vm14 = vmand %vm144_vm13, %vm135_vm12 }
 0x17d   :  { %v3340_v3 = vpop.f32.mrb[0].mxu0 }
 0x17e   :  { %v894_v30 = vmul.f32 %v3321_v45, %v3340_v3  ;;  %v3347_v33 = vpop.f32.mrb[1].mxu0 }
 0x17f   :  { %v895_v50 = vmul.f32 %v3331_v4, %v3347_v33 }
 0x180   :  { %v904_v63 = vsel %vm903_vm8, %v894_v30, 0.0 }
 0x181   :  { %v905_v53 = vsel %vm903_vm8, %v895_v50, 0.0 }
 0x182   :  { %v906_v56 = vadd.f32 %v905_v53, %v904_v63  ;;  %v171_v63 = vsel %vm153_vm14, %v162_v27, %v124_v35 }
 0x183   :  { %vm180_vm15 = vcmp.lt.s32.totalorder %v171_v63, 32 }
 0x186   :  { %v3369_v57 = vpop.f32.mrb[0].mxu1 }
 0x187   :  { %v896_v43 = vmul.f32 %v3362_v51, %v3369_v57  ;;  %v3374_v55 = vpop.f32.mrb[1].mxu1 }
 0x188   :  { %v897_v12 = vmul.f32 %v3366_v61, %v3374_v55 }
 0x189   :  { %v907_v24 = vsel %vm903_vm8, %v896_v43, 0.0 }
 0x18a   :  { %v908_v31 = vadd.f32 %v907_v24, %v906_v56  ;;  %v909_v48 = vsel %vm903_vm8, %v897_v12, 0.0  ;;  %v3418_v56 = vsel %vm180_vm15, 1.0, %v2551_v17 }
 0x18c   :  { %v910_v8 = vadd.f32 %v909_v48, %v908_v31 }
 0x19d   :  { %v3391_v62 = vpop.f32.mrb[2].mxu0 }
 0x19e   :  { %v898_v5 = vmul.f32 %v3386_v41, %v3391_v62  ;;  %v3398_v58 = vpop.f32.mrb[3].mxu0 }
 0x19f   :  { %v899_v28 = vmul.f32 %v3389_v7, %v3398_v58  ;;  %v3405_v42 = vpop.f32.mrb[2].mxu1 }
 0x1a0   :  { %v911_v39 = vsel %vm903_vm8, %v898_v5, 0.0  ;;  %v900_v16 = vmul.f32 %v3394_v40, %v3405_v42  ;;  %v3410_v47 = vpop.f32.mrb[3].mxu1 }
 0x1a1   :  { %v912_v21 = vadd.f32 %v911_v39, %v910_v8  ;;  %v913_v34 = vsel %vm903_vm8, %v899_v28, 0.0  ;;  %v901_v30 = vmul.f32 %v3401_v38, %v3410_v47 }
 0x1a2   :  { %v915_v19 = vsel %vm903_vm8, %v900_v16, 0.0 }
 0x1a3   :  { %v914_v25 = vadd.f32 %v913_v34, %v912_v21  ;;  %v917_v50 = vsel %vm903_vm8, %v901_v30, 0.0 }
 0x1a5   :  { %v916_v52 = vadd.f32 %v915_v19, %v914_v25 }
 0x1a7   :  { %v918_v53 = vadd.f32 %v917_v50, %v916_v52 }
 0x1af   :  { %v3420_v18 = vpop.f32.mrb[4].mxu0 }
 0x1b0   :  { %v902_v54 = vmul.f32 %v3418_v56, %v3420_v18  ;;  %v1956_v60 = vpop.f32.mrb[5].mxu0 }
 0x1b2   :  { %v919_v59 = vsel %vm903_vm8, %v902_v54, 0.0 }
 0x1b3   :  { %v920_v43 = vadd.f32 %v919_v59, %v918_v53 }
 0x1b5   :  { %921 = vadd.xlane.f32.xlu0 %v920_v43 }
 0x1c5   :  { %v3425_v29 = vpop.f32.mrb[4].mxu1 }
 0x1c6   :  { %v1608_v12 = vmul.f32 %v3321_v45, %v3425_v29  ;;  %v3429_v46 = vpop.f32.mrb[5].mxu1 }
 0x1c7   :  { %v1609_v17 = vmul.f32 %v3331_v4, %v3429_v46 }
 0x1c8   :  { %v1617_v13 = vsel %vm903_vm8, %v1608_v12, 0.0 }
 0x1c9   :  { %v1618_v24 = vsel %vm903_vm8, %v1609_v17, 0.0 }
 0x1ca   :  { %v1619_v37 = vadd.f32 %v1618_v24, %v1617_v13 }
 0x1dd   :  { %v3435_v31 = vpop.f32.mrb[6].mxu0 }
 0x1de   :  { %v1610_v48 = vmul.f32 %v3362_v51, %v3435_v31  ;;  %v3439_v32 = vpop.f32.mrb[7].mxu0 }
 0x1df   :  { %v1611_v20 = vmul.f32 %v3366_v61, %v3439_v32 }
 0x1e0   :  { %v1620_v8 = vsel %vm903_vm8, %v1610_v48, 0.0 }
 0x1e1   :  { %v1621_v0 = vadd.f32 %v1620_v8, %v1619_v37  ;;  %v1622_v1 = vsel %vm903_vm8, %v1611_v20, 0.0 }
 0x1e3   :  { %v1623_v36 = vadd.f32 %v1622_v1, %v1621_v0 }
 0x1e4   :  { %v3445_v9 = vpop.f32.mrb[6].mxu1 }
 0x1e5   :  { %v1612_v23 = vmul.f32 %v3386_v41, %v3445_v9  ;;  %v3449_v49 = vpop.f32.mrb[7].mxu1 }
 0x1e6   :  { %v1613_v10 = vmul.f32 %v3389_v7, %v3449_v49 }
 0x1e7   :  { %v1624_v26 = vsel %vm903_vm8, %v1612_v23, 0.0 }
 0x1e8   :  { %v1625_v44 = vadd.f32 %v1624_v26, %v1623_v36  ;;  %v1626_v2 = vsel %vm903_vm8, %v1613_v10, 0.0 }
 0x1ea   :  { %v1627_v6 = vadd.f32 %v1626_v2, %v1625_v44 }
 0x1f6   :  { %v3455_v11 = vpop.f32.mrb[8].mxu0  ;;  %v3457_v22 = vpop.f32.mrb[8].mxu1 }
 0x1f7   :  { %v1614_v14 = vmul.f32 %v3394_v40, %v3455_v11  ;;  %v3461_v15 = vpop.f32.mrb[9].mxu0  ;;  %v1616_v35 = vmul.f32 %v3418_v56, %v3457_v22  ;;  %v1977_v5 = vpop.f32.mrb[9].mxu1 }
 0x1f8   :  { %v1615_v28 = vmul.f32 %v3401_v38, %v3461_v15 }
 0x1f9   :  { %v1628_v39 = vsel %vm903_vm8, %v1614_v14, 0.0  ;;  %v1632_v34 = vsel %vm903_vm8, %v1616_v35, 0.0 }
 0x1fa   :  { %v1630_v16 = vsel %vm903_vm8, %v1615_v28, 0.0  ;;  %v1629_v21 = vadd.f32 %v1628_v39, %v1627_v6 }
 0x1fc   :  { %v1631_v30 = vadd.f32 %v1630_v16, %v1629_v21 }
 0x1fe   :  { %v1633_v19 = vadd.f32 %v1632_v34, %v1631_v30 }
 0x200   :  { %1634 = vadd.xlane.f32.xlu1 %v1633_v19 }
 0x242   :  { %v922_v25 = vpop.xlane.xlu0 %921 }
 0x28d   :  { %v1635_v27 = vpop.xlane.xlu1 %1634 }
 0x28e   :  { %v1636_v50 = vadd.f32 %v1635_v27, %v922_v25 }
 0x290   :  { %v3470_v52 = vmul.f32 0.00048828125, %v1636_v50 }
 0x292   :  { %v1638_v63 = vsub.f32 %v3340_v3, %v3470_v52  ;;  %v1639_v53 = vsub.f32 %v3347_v33, %v3470_v52  ;;  %v1640_v54 = vsub.f32 %v3369_v57, %v3470_v52  ;;  %v1641_v60 = vsub.f32 %v3374_v55, %v3470_v52 }
 0x293   :  { %v1642_v59 = vsub.f32 %v3391_v62, %v3470_v52  ;;  %v1643_v13 = vsub.f32 %v3398_v58, %v3470_v52  ;;  %v1644_v37 = vsub.f32 %v3405_v42, %v3470_v52  ;;  %v1645_v1 = vsub.f32 %v3410_v47, %v3470_v52 }
 0x294   :  { %v1647_v43 = vmul.f32 %v3321_v45, %v1638_v63  ;;  %v1648_v12 = vmul.f32 %v3331_v4, %v1639_v53  ;;  %v1649_v17 = vmul.f32 %v3362_v51, %v1640_v54  ;;  %v1650_v24 = vmul.f32 %v3366_v61, %v1641_v60 }
 0x295   :  { %v1651_v48 = vmul.f32 %v3386_v41, %v1642_v59  ;;  %v1646_v36 = vsub.f32 %v3420_v18, %v3470_v52  ;;  %v1652_v10 = vmul.f32 %v3389_v7, %v1643_v13  ;;  %v1653_v2 = vmul.f32 %v3394_v40, %v1644_v37 }
 0x296   :  { %v1656_v20 = vmul.f32 %v1647_v43, %v1647_v43  ;;  %v1657_v8 = vmul.f32 %v1648_v12, %v1648_v12  ;;  %v1658_v0 = vmul.f32 %v1649_v17, %v1649_v17  ;;  %v1659_v26 = vmul.f32 %v1650_v24, %v1650_v24 }
 0x297   :  { %v1660_v6 = vmul.f32 %v1651_v48, %v1651_v48  ;;  %v1685_v5 = vsub.f32 %v3425_v29, %v3470_v52  ;;  %v1686_v28 = vsub.f32 %v3429_v46, %v3470_v52  ;;  %v1687_v39 = vsub.f32 %v3435_v31, %v3470_v52 }
 0x298   :  { %v1665_v23 = vsel %vm903_vm8, %v1656_v20, 0.0  ;;  %v1666_v44 = vsel %vm903_vm8, %v1657_v8, 0.0  ;;  %v1668_v35 = vsel %vm903_vm8, %v1658_v0, 0.0  ;;  %v1654_v16 = vmul.f32 %v3401_v38, %v1645_v1 }
 0x299   :  { %v1667_v14 = vadd.f32 %v1666_v44, %v1665_v23  ;;  %v1655_v21 = vmul.f32 %v3418_v56, %v1646_v36  ;;  %v1688_v30 = vsub.f32 %v3439_v32, %v3470_v52  ;;  %v1661_v19 = vmul.f32 %v1652_v10, %v1652_v10 }
 0x29a   :  { %v1670_v25 = vsel %vm903_vm8, %v1659_v26, 0.0  ;;  %v1689_v27 = vsub.f32 %v3445_v9, %v3470_v52  ;;  %v1694_v50 = vmul.f32 %v3321_v45, %v1685_v5  ;;  %v1662_v63 = vmul.f32 %v1653_v2, %v1653_v2 }
 0x29b   :  { %v1669_v34 = vadd.f32 %v1668_v35, %v1667_v14  ;;  %v1695_v54 = vmul.f32 %v3331_v4, %v1686_v28  ;;  %v1696_v60 = vmul.f32 %v3362_v51, %v1687_v39  ;;  %v1672_v59 = vsel %vm903_vm8, %v1660_v6, 0.0 }
 0x29c   :  { %v1690_v43 = vsub.f32 %v3449_v49, %v3470_v52  ;;  %v1697_v12 = vmul.f32 %v3366_v61, %v1688_v30  ;;  %v1663_v17 = vmul.f32 %v1654_v16, %v1654_v16  ;;  %v1703_v24 = vmul.f32 %v1694_v50, %v1694_v50 }
 0x29d   :  { %v1671_v53 = vadd.f32 %v1670_v25, %v1669_v34  ;;  %v1704_v37 = vmul.f32 %v1695_v54, %v1695_v54  ;;  %v1674_v48 = vsel %vm903_vm8, %v1661_v19, 0.0  ;;  %v1691_v45 = vsub.f32 %v3455_v11, %v3470_v52 }
 0x29e   :  { %v1698_v4 = vmul.f32 %v3386_v41, %v1689_v27  ;;  %v1705_v20 = vmul.f32 %v1696_v60, %v1696_v60  ;;  %v1664_v51 = vmul.f32 %v1655_v21, %v1655_v21  ;;  %v1676_v0 = vsel %vm903_vm8, %v1662_v63, 0.0 }
 0x29f   :  { %v1673_v13 = vadd.f32 %v1672_v59, %v1671_v53  ;;  %v1692_v1 = vsub.f32 %v3461_v15, %v3470_v52  ;;  %v1699_v61 = vmul.f32 %v3389_v7, %v1690_v43  ;;  %v1706_v36 = vmul.f32 %v1697_v12, %v1697_v12 }
 0x2a0   :  { %v1712_v23 = vsel %vm903_vm8, %v1703_v24, 0.0  ;;  %v1713_v10 = vsel %vm903_vm8, %v1704_v37, 0.0  ;;  %v1678_v44 = vsel %vm903_vm8, %v1663_v17, 0.0  ;;  %v1693_v41 = vsub.f32 %v3457_v22, %v3470_v52 }
 0x2a1   :  { %v1675_v8 = vadd.f32 %v1674_v48, %v1673_v13  ;;  %v1714_v2 = vadd.f32 %v1713_v10, %v1712_v23  ;;  %v1700_v6 = vmul.f32 %v3394_v40, %v1691_v45  ;;  %v1707_v14 = vmul.f32 %v1698_v4, %v1698_v4  ;;  %v1735_v4 = vld [vmem:[%s3619_s2] sm:$0xf] }
 0x2a2   :  { %v1715_v35 = vsel %vm903_vm8, %v1705_v20, 0.0  ;;  %v1680_v7 = vsel %vm903_vm8, %v1664_v51, 0.0  ;;  %v1701_v39 = vmul.f32 %v3401_v38, %v1692_v1  ;;  %v1708_v16 = vmul.f32 %v1699_v61, %v1699_v61 }
 0x2a3   :  { %v1677_v26 = vadd.f32 %v1676_v0, %v1675_v8  ;;  %v1716_v28 = vadd.f32 %v1715_v35, %v1714_v2  ;;  %v1717_v21 = vsel %vm903_vm8, %v1706_v36, 0.0  ;;  %v1702_v19 = vmul.f32 %v3418_v56, %v1693_v41  ;;  %v1737_v8 = vld [vmem:[%s3620_s3] sm:$0xf] }
 0x2a4   :  { %v1709_v25 = vmul.f32 %v1700_v6, %v1700_v6  ;;  %v1719_v27 = vsel %vm903_vm8, %v1707_v14, 0.0  ;;  %v1710_v50 = vmul.f32 %v1701_v39, %v1701_v39  ;;  %v1721_v63 = vsel %vm903_vm8, %v1708_v16, 0.0 }
 0x2a5   :  { %v1679_v5 = vadd.f32 %v1678_v44, %v1677_v26  ;;  %v1718_v30 = vadd.f32 %v1717_v21, %v1716_v28  ;;  %v1711_v54 = vmul.f32 %v1702_v19, %v1702_v19  ;;  %v2555_v56 = vmov 0  }
 0x2a6   :  { %v1723_v60 = vsel %vm903_vm8, %v1709_v25, 0.0  ;;  %v1725_v59 = vsel %vm903_vm8, %v1710_v50, 0.0  ;;  %2540 = vset.pattern.permute.xlu1 %v2555_v56  ;;  %2541 = vset.pattern.permute.xlu0 %v2555_v56 }
 0x2a7   :  { %v1681_v34 = vadd.f32 %v1680_v7, %v1679_v5  ;;  %v1720_v40 = vadd.f32 %v1719_v27, %v1718_v30  ;;  %v1727_v12 = vsel %vm903_vm8, %v1711_v54, 0.0 }
 0x2a9   :  { %1682 = vadd.xlane.f32.xlu0 %v1681_v34  ;;  %v1722_v53 = vadd.f32 %v1721_v63, %v1720_v40 }
 0x2ab   :  { %v1724_v38 = vadd.f32 %v1723_v60, %v1722_v53 }
 0x2ad   :  { %v1726_v43 = vadd.f32 %v1725_v59, %v1724_v38 }
 0x2af   :  { %v1728_v17 = vadd.f32 %v1727_v12, %v1726_v43 }
 0x2b1   :  { %1729 = vadd.xlane.f32.xlu0 %v1728_v17 }
 0x336   :  { %v1683_v13 = vpop.xlane.xlu0 %1682 }
 0x33e   :  { %v1730_v24 = vpop.xlane.xlu0 %1729 }
 0x33f   :  { %v1731_v37 = vadd.f32 %v1730_v24, %v1683_v13 }
 0x341   :  { %v1732_v48 = vmul.f32 0.00048828125, %v1731_v37 }
 0x343   :  { %v1733_v45 = vadd.f32 1e-05, %v1732_v48 }
 0x345   :  { %2542 = vrsqrt.f32 %v1733_v45 }
 0x34f   :  { %v2543_v20 = vpop.eup %2542 }
 0x350   :  { %v1736_v51 = vmul.f32 %v2543_v20, %v1735_v4 }
 0x352   :  { %1742 = vperm.xlu1 %2540, %v1736_v51   ;;  %v1738_v0 = vmul.f32 %v1736_v51, %v3470_v52 }
 0x354   :  { %v1739_v1 = vsub.f32 %v1737_v8, %v1738_v0 }
 0x356   :  { %1756 = vperm.xlu0 %2541, %v1739_v1  }
 0x3d1   :  { %v1743_v61 = vpop.permute.xlu1 %1742 }
 0x3d2   :  { %v1745_v36 = vmul.f32 %v1743_v61, %v3340_v3  ;;  %v1746_v23 = vmul.f32 %v1743_v61, %v3347_v33  ;;  %v1747_v10 = vmul.f32 %v1743_v61, %v3369_v57  ;;  %v1748_v26 = vmul.f32 %v1743_v61, %v3374_v55 }
 0x3d3   :  { %v1749_v44 = vmul.f32 %v1743_v61, %v3391_v62  ;;  %v1750_v2 = vmul.f32 %v1743_v61, %v3398_v58  ;;  %v1751_v41 = vmul.f32 %v1743_v61, %v3405_v42  ;;  %v1752_v6 = vmul.f32 %v1743_v61, %v3410_v47 }
 0x3d4   :  { %v1753_v52 = vmul.f32 %v1743_v61, %v3420_v18  ;;  %v1816_v14 = vmul.f32 %v1743_v61, %v3425_v29  ;;  %v1817_v3 = vmul.f32 %v1743_v61, %v3429_v46  ;;  %v1818_v33 = vmul.f32 %v1743_v61, %v3435_v31 }
 0x3d5   :  { %v1819_v57 = vmul.f32 %v1743_v61, %v3439_v32  ;;  %v1820_v55 = vmul.f32 %v1743_v61, %v3445_v9  ;;  %v1821_v62 = vmul.f32 %v1743_v61, %v3449_v49  ;;  %v1822_v58 = vmul.f32 %v1743_v61, %v3455_v11  ;;  %v1757_v35 = vpop.permute.xlu0 %1756 }
 0x3d6   :  { %v1823_v42 = vmul.f32 %v1743_v61, %v3461_v15  ;;  %v1824_v47 = vmul.f32 %v1743_v61, %v3457_v22  ;;  %v1759_v18 = vadd.f32 %v1757_v35, %v1745_v36  ;;  %v1760_v5 = vadd.f32 %v1757_v35, %v1746_v23 }
 0x3d7   :  { %v1761_v29 = vadd.f32 %v1757_v35, %v1747_v10  ;;  %v1762_v28 = vadd.f32 %v1757_v35, %v1748_v26  ;;  %v1763_v46 = vadd.f32 %v1757_v35, %v1749_v44  ;;  %v1764_v7 = vadd.f32 %v1757_v35, %v1750_v2 }
 0x3d8   :  { %v1765_v31 = vadd.f32 %v1757_v35, %v1751_v41  ;;  %v1766_v39 = vadd.f32 %v1757_v35, %v1752_v6  ;;  %v1767_v32 = vadd.f32 %v1757_v35, %v1753_v52  ;;  %vm1768_vm8 = vcmp.ge.f32.partialorder %v1759_v18, 0.0 }
 0x3d9   :  { %vm1769_vm0 = vcmp.ge.f32.partialorder %v1760_v5, 0.0  ;;  %vm1770_vm1 = vcmp.ge.f32.partialorder %v1761_v29, 0.0  ;;  %vm1771_vm2 = vcmp.ge.f32.partialorder %v1762_v28, 0.0  ;;  %vm1772_vm3 = vcmp.ge.f32.partialorder %v1763_v46, 0.0 }
 0x3da   :  { %vm1773_vm4 = vcmp.ge.f32.partialorder %v1764_v7, 0.0  ;;  %vm1774_vm5 = vcmp.ge.f32.partialorder %v1765_v31, 0.0  ;;  %vm1775_vm6 = vcmp.ge.f32.partialorder %v1766_v39, 0.0  ;;  %vm1776_vm7 = vcmp.ge.f32.partialorder %v1767_v32, 0.0 }
 0x3db   :  { %v1777_v9 = vmul.f32 0.01, %v1759_v18  ;;  %v1778_v49 = vmul.f32 0.01, %v1760_v5  ;;  %v1779_v11 = vmul.f32 0.01, %v1761_v29  ;;  %v1825_v22 = vadd.f32 %v1816_v14, %v1757_v35 }
 0x3dc   :  { %v1780_v15 = vmul.f32 0.01, %v1762_v28  ;;  %v1781_v16 = vmul.f32 0.01, %v1763_v46  ;;  %v1782_v21 = vmul.f32 0.01, %v1764_v7  ;;  %v1826_v34 = vadd.f32 %v1817_v3, %v1757_v35 }
 0x3dd   :  { %v1783_v30 = vmul.f32 0.01, %v1765_v31  ;;  %v1784_v19 = vmul.f32 0.01, %v1766_v39  ;;  %v1785_v25 = vmul.f32 0.01, %v1767_v32  ;;  %v1786_v27 = vsel %vm1768_vm8, %v1759_v18, %v1777_v9 }
 0x3de   :  { %v1787_v40 = vsel %vm1769_vm0, %v1760_v5, %v1778_v49  ;;  %v1788_v50 = vsel %vm1770_vm1, %v1761_v29, %v1779_v11  ;;  %v1789_v63 = vsel %vm1771_vm2, %v1762_v28, %v1780_v15  ;;  %v1790_v53 = vsel %vm1772_vm3, %v1763_v46, %v1781_v16 }
 0x3df   :  { %v1791_v54 = vsel %vm1773_vm4, %v1764_v7, %v1782_v21  ;;  %v1792_v60 = vsel %vm1774_vm5, %v1765_v31, %v1783_v30  ;;  %v1793_v38 = vsel %vm1775_vm6, %v1766_v39, %v1784_v19  ;;  %v1794_v59 = vsel %vm1776_vm7, %v1767_v32, %v1785_v25 }
 0x3e0   :  { %v1803_v43 = vcombine.low %v1786_v27, %v1787_v40  ;;  %v1804_v12 = vcombine.low %v1788_v50, %v1789_v63  ;;  %v1805_v17 = vcombine.low %v1790_v53, %v1791_v54  ;;  %v1806_v56 = vcombine.low %v1792_v60, %v1793_v38  ;;  %1815 = vst [vmem:[%s3621_s4 + $0x20] sm:$0xf] %v1794_v59 }
 0x3e1   :  { %v1827_v13 = vadd.f32 %v1818_v33, %v1757_v35  ;;  %v1828_v24 = vadd.f32 %v1819_v57, %v1757_v35  ;;  %v1829_v37 = vadd.f32 %v1820_v55, %v1757_v35  ;;  %v1830_v48 = vadd.f32 %v1821_v62, %v1757_v35 }
 0x3e2   :  { %1811 = vst [vmem:[%s3621_s4] sm:$0xff] %v1803_v43  ;;  %1812 = vst [vmem:[%s3621_s4 + $0x8] sm:$0xff] %v1804_v12  ;;  %v1831_v45 = vadd.f32 %v1822_v58, %v1757_v35  ;;  %v1832_v4 = vadd.f32 %v1823_v42, %v1757_v35  ;;  %v1833_v20 = vadd.f32 %v1824_v47, %v1757_v35  ;;  %vm1834_vm9 = vcmp.ge.f32.partialorder %v1825_v22, 0.0 }
 0x3e3   :  { %1813 = vst [vmem:[%s3621_s4 + $0x10] sm:$0xff] %v1805_v17  ;;  %1814 = vst [vmem:[%s3621_s4 + $0x18] sm:$0xff] %v1806_v56  ;;  %vm1835_vm10 = vcmp.ge.f32.partialorder %v1826_v34, 0.0  ;;  %vm1836_vm11 = vcmp.ge.f32.partialorder %v1827_v13, 0.0  ;;  %vm1837_vm12 = vcmp.ge.f32.partialorder %v1828_v24, 0.0  ;;  %vm1838_vm13 = vcmp.ge.f32.partialorder %v1829_v37, 0.0 }
 0x3e4   :  { %vm1839_vm14 = vcmp.ge.f32.partialorder %v1830_v48, 0.0  ;;  %vm1840_vm15 = vcmp.ge.f32.partialorder %v1831_v45, 0.0  ;;  %vm1841_vm8 = vcmp.ge.f32.partialorder %v1832_v4, 0.0  ;;  %vm1842_vm0 = vcmp.ge.f32.partialorder %v1833_v20, 0.0 }
 0x3e5   :  { %v1843_v51 = vmul.f32 0.01, %v1825_v22  ;;  %v1844_v8 = vmul.f32 0.01, %v1826_v34  ;;  %v1845_v0 = vmul.f32 0.01, %v1827_v13 }
 0x3e6   :  { %v1846_v1 = vmul.f32 0.01, %v1828_v24  ;;  %v1847_v61 = vmul.f32 0.01, %v1829_v37  ;;  %v1848_v36 = vmul.f32 0.01, %v1830_v48 }
 0x3e7   :  { %v1849_v23 = vmul.f32 0.01, %v1831_v45  ;;  %v1850_v10 = vmul.f32 0.01, %v1832_v4  ;;  %v1851_v26 = vmul.f32 0.01, %v1833_v20  ;;  %v1852_v44 = vsel %vm1834_vm9, %v1825_v22, %v1843_v51 }
 0x3e8   :  { %v1853_v2 = vsel %vm1835_vm10, %v1826_v34, %v1844_v8  ;;  %v1854_v41 = vsel %vm1836_vm11, %v1827_v13, %v1845_v0  ;;  %v1855_v6 = vsel %vm1837_vm12, %v1828_v24, %v1846_v1  ;;  %v1856_v52 = vsel %vm1838_vm13, %v1829_v37, %v1847_v61 }
 0x3e9   :  { %v1857_v14 = vsel %vm1839_vm14, %v1830_v48, %v1848_v36  ;;  %v1858_v3 = vsel %vm1840_vm15, %v1831_v45, %v1849_v23  ;;  %v1859_v33 = vsel %vm1841_vm8, %v1832_v4, %v1850_v10  ;;  %v1860_v57 = vsel %vm1842_vm0, %v1833_v20, %v1851_v26 }
 0x3ea   :  { %v1869_v55 = vcombine.low %v1852_v44, %v1853_v2  ;;  %v1870_v62 = vcombine.low %v1854_v41, %v1855_v6  ;;  %v1871_v58 = vcombine.low %v1856_v52, %v1857_v14  ;;  %v1872_v35 = vcombine.low %v1858_v3, %v1859_v33  ;;  %1915 = vst [vmem:[%s3621_s4 + $0x44] sm:$0xf] %v1860_v57 }
 0x3ec   :  { %1911 = vst [vmem:[%s3621_s4 + $0x24] sm:$0xff] %v1869_v55  ;;  %1912 = vst [vmem:[%s3621_s4 + $0x2c] sm:$0xff] %v1870_v62 }
 0x3ed   :  { %1913 = vst [vmem:[%s3621_s4 + $0x34] sm:$0xff] %v1871_v58  ;;  %1914 = vst [vmem:[%s3621_s4 + $0x3c] sm:$0xff] %v1872_v35 }

</bundles_post_ra>
